<compile_context>
chip_gen: v7x
topology: tpu7x:2x2x1
jax: 0.10.0
libtpu: 0.0.40
codegen_flags: <defaults>
</compile_context>

<pallas_src>
import math
from functools import partial

import jax
import jax.numpy as jnp
import numpy as np
from jax import lax
from jax.experimental import pallas as pl
from jax.experimental.pallas import tpu as pltpu

# ---------------- model config (small, consistent with the module) ----------
B = 2         # batch
S = 8         # sequence length
D_MODEL = 32
H = 4
DROPOUT = 0.0  # eval-mode / p=0 => identity
# TODO(synk): training-mode dropout on attention probabilities is not
#             implemented (nn.Dropout is a no-op in eval mode / p=0).


def mha_kernel(q_ref, k_ref, v_ref, mask_ref,
               wq_ref, bq_ref, wk_ref, bk_ref, wv_ref, bv_ref,
               wo_ref, bo_ref, out_ref, heads_ref, *, num_heads):
    # One grid step == one batch element.
    # q/k/v_ref : (S, D)   mask_ref : (S, S) int32
    # w*_ref    : (D, D)   b*_ref   : (1, D)
    # out_ref   : (S, D)   heads_ref: (S, D) f32 VMEM scratch (head concat)
    seq, d_model = q_ref.shape
    d_k = d_model // num_heads
    scale = jnp.float32(1.0 / math.sqrt(d_k))

    # Three full-width projection matmuls (MXU) + bias adds.
    q_p = jnp.dot(q_ref[...], wq_ref[...],
                  preferred_element_type=jnp.float32) + bq_ref[...]
    k_p = jnp.dot(k_ref[...], wk_ref[...],
                  preferred_element_type=jnp.float32) + bk_ref[...]
    v_p = jnp.dot(v_ref[...], wv_ref[...],
                  preferred_element_type=jnp.float32) + bv_ref[...]

    # Additive mask bias, computed once per batch element (cheap VPU cmp+sel).
    mask_bias = jnp.where(mask_ref[...] == 0,
                          jnp.float32(-1e9), jnp.float32(0.0))          # (S, S)

    for h in range(num_heads):              # static unroll, num_heads = 4
        lo = h * d_k
        qh = q_p[:, lo:lo + d_k]            # (S, d_k)
        kh = k_p[:, lo:lo + d_k]            # (S, d_k)
        vh = v_p[:, lo:lo + d_k]            # (S, d_k)

        # Q @ K^T via contraction over the last dims (no explicit transpose).
        scores = lax.dot_general(
            qh, kh, (((1,), (1,)), ((), ())),
            preferred_element_type=jnp.float32) * scale                 # (S, S)
        scores = scores + mask_bias

        # Numerically-stable softmax along the last axis (f32 throughout).
        m = jnp.max(scores, axis=-1, keepdims=True)
        p = jnp.exp(scores - m)
        p = p / jnp.sum(p, axis=-1, keepdims=True)   # exact div: torch parity

        head_out = jnp.dot(p, vh, preferred_element_type=jnp.float32)   # (S, d_k)

        # Scatter this head's output at its lane offset in the concat scratch.
        heads_ref[:, lo:lo + d_k] = head_out

    # ONE output-projection matmul + bias, ONE full store.
    out_ref[...] = (jnp.dot(heads_ref[...], wo_ref[...],
                            preferred_element_type=jnp.float32)
                    + bo_ref[...]).astype(out_ref.dtype)


def multi_head_attention(q, k, v, mask, params, num_heads):
    """q, k, v: [B, S, D]; mask: [B, S, S] int32 (1=keep); params: weights."""
    b, s, d_model = q.shape
    assert d_model % num_heads == 0, "d_model not divisible by h"
    assert k.shape == q.shape and v.shape == q.shape
    assert mask.shape == (b, s, s)

    per_batch = lambda i: (i, 0, 0)   # one batch element per grid step
    whole = lambda i: (0, 0)          # weights: constant block -> VMEM resident

    grid_spec = pltpu.PrefetchScalarGridSpec(
        num_scalar_prefetch=0,
        grid=(b,),
        in_specs=[
            pl.BlockSpec((None, s, d_model), per_batch),   # q
            pl.BlockSpec((None, s, d_model), per_batch),   # k
            pl.BlockSpec((None, s, d_model), per_batch),   # v
            pl.BlockSpec((None, s, s), per_batch),         # mask
            pl.BlockSpec((d_model, d_model), whole),       # wq
            pl.BlockSpec((1, d_model), whole),             # bq
            pl.BlockSpec((d_model, d_model), whole),       # wk
            pl.BlockSpec((1, d_model), whole),             # bk
            pl.BlockSpec((d_model, d_model), whole),       # wv
            pl.BlockSpec((1, d_model), whole),             # bv
            pl.BlockSpec((d_model, d_model), whole),       # wo
            pl.BlockSpec((1, d_model), whole),             # bo
        ],
        out_specs=pl.BlockSpec((None, s, d_model), per_batch),
        scratch_shapes=[pltpu.VMEM((s, d_model), jnp.float32)],
    )

    return pl.pallas_call(
        partial(mha_kernel, num_heads=num_heads),
        out_shape=jax.ShapeDtypeStruct((b, s, d_model), jnp.float32),
        grid_spec=grid_spec,
        compiler_params=pltpu.CompilerParams(
            dimension_semantics=("parallel",)),
    )(q, k, v, mask,
      params["wq"], params["bq"], params["wk"], params["bk"],
      params["wv"], params["bv"], params["wo"], params["bo"])


def reference_mha(q, k, v, mask, params, num_heads):
    """Pure-JAX reference mirroring the PyTorch forward."""
    b, s, d_model = q.shape
    d_k = d_model // num_heads

    def lin(x, w, bias):
        return x @ w + bias[0]

    Q = lin(q, params["wq"], params["bq"])
    K = lin(k, params["wk"], params["bk"])
    V = lin(v, params["wv"], params["bv"])

    def split(x):  # [B,S,D] -> [B,H,S,d_k]
        return x.reshape(b, s, num_heads, d_k).transpose(0, 2, 1, 3)

    Qh, Kh, Vh = split(Q), split(K), split(V)
    scores = jnp.einsum("bhqd,bhkd->bhqk", Qh, Kh) / math.sqrt(d_k)
    scores = jnp.where(mask[:, None, :, :] == 0, -1e9, scores)
    p = jax.nn.softmax(scores, axis=-1)
    x = jnp.einsum("bhqk,bhkd->bhqd", p, Vh)
    x = x.transpose(0, 2, 1, 3).reshape(b, s, d_model)
    return lin(x, params["wo"], params["bo"])


def init_params(key):
    ks = jax.random.split(key, 8)
    bound = 1.0 / math.sqrt(D_MODEL)

    def w(k):
        return jax.random.uniform(k, (D_MODEL, D_MODEL), jnp.float32, -bound, bound)

    def b(k):
        return jax.random.uniform(k, (1, D_MODEL), jnp.float32, -bound, bound)

    return dict(
        wq=w(ks[0]), bq=b(ks[1]),
        wk=w(ks[2]), bk=b(ks[3]),
        wv=w(ks[4]), bv=b(ks[5]),
        wo=w(ks[6]), bo=b(ks[7]),
    )


if __name__ == "__main__":
    # Full-f32 accuracy for the pure-JAX reference matmuls (torch parity).
    jax.config.update("jax_default_matmul_precision", "highest")

    key = jax.random.PRNGKey(0)
    kq, kk, kv, kp = jax.random.split(key, 4)

    q = jax.random.normal(kq, (B, S, D_MODEL), jnp.float32)
    k = jax.random.normal(kk, (B, S, D_MODEL), jnp.float32)
    v = jax.random.normal(kv, (B, S, D_MODEL), jnp.float32)

    # Causal mask (1 = attend, 0 = masked), same for every batch element.
    causal = jnp.tril(jnp.ones((S, S), jnp.int32))
    mask = jnp.broadcast_to(causal, (B, S, S))

    params = init_params(kp)

    out = multi_head_attention(q, k, v, mask, params, H)
    out = jax.block_until_ready(out)

    ref = reference_mha(q, k, v, mask, params, H)
    np.testing.assert_allclose(np.asarray(out), np.asarray(ref),
                               rtol=1e-4, atol=1e-4)

    print("KERNEL_OK")
</pallas_src>

<mosaic_0001>
module attributes {stable_mosaic.version = 11 : i64} {
  func.func @mha_kernel(%arg0: i32, %arg1: memref<1x8x32xf32, #tpu.memory_space<vmem>>, %arg2: memref<1x8x32xf32, #tpu.memory_space<vmem>>, %arg3: memref<1x8x32xf32, #tpu.memory_space<vmem>>, %arg4: memref<1x8x8xi32, #tpu.memory_space<vmem>>, %arg5: memref<32x32xf32, #tpu.memory_space<vmem>>, %arg6: memref<1x32xf32, #tpu.memory_space<vmem>>, %arg7: memref<32x32xf32, #tpu.memory_space<vmem>>, %arg8: memref<1x32xf32, #tpu.memory_space<vmem>>, %arg9: memref<32x32xf32, #tpu.memory_space<vmem>>, %arg10: memref<1x32xf32, #tpu.memory_space<vmem>>, %arg11: memref<32x32xf32, #tpu.memory_space<vmem>>, %arg12: memref<1x32xf32, #tpu.memory_space<vmem>>, %arg13: memref<1x8x32xf32, #tpu.memory_space<vmem>>, %arg14: memref<8x32xf32, #tpu.memory_space<vmem>>) attributes {dimension_semantics = [#tpu.dimension_semantics<parallel>], iteration_bounds = array<i64: 2>, scalar_prefetch = 0 : i64, scratch_operands = 1 : i64, tpu.core_type = #tpu.core_type<tc>, window_params = [{transform_indices = @transform_0, window_bounds = array<i64: 1, 8, 32>}, {transform_indices = @transform_1, window_bounds = array<i64: 1, 8, 32>}, {transform_indices = @transform_2, window_bounds = array<i64: 1, 8, 32>}, {transform_indices = @transform_3, window_bounds = array<i64: 1, 8, 8>}, {pipeline_mode = #tpu.pipeline_mode<synchronous>, transform_indices = @transform_4, window_bounds = array<i64: 32, 32>}, {pipeline_mode = #tpu.pipeline_mode<synchronous>, transform_indices = @transform_5, window_bounds = array<i64: 1, 32>}, {pipeline_mode = #tpu.pipeline_mode<synchronous>, transform_indices = @transform_6, window_bounds = array<i64: 32, 32>}, {pipeline_mode = #tpu.pipeline_mode<synchronous>, transform_indices = @transform_7, window_bounds = array<i64: 1, 32>}, {pipeline_mode = #tpu.pipeline_mode<synchronous>, transform_indices = @transform_8, window_bounds = array<i64: 32, 32>}, {pipeline_mode = #tpu.pipeline_mode<synchronous>, transform_indices = @transform_9, window_bounds = array<i64: 1, 32>}, {pipeline_mode = #tpu.pipeline_mode<synchronous>, transform_indices = @transform_10, window_bounds = array<i64: 32, 32>}, {pipeline_mode = #tpu.pipeline_mode<synchronous>, transform_indices = @transform_11, window_bounds = array<i64: 1, 32>}, {transform_indices = @transform_12, window_bounds = array<i64: 1, 8, 32>}]} {
    %c0 = arith.constant 0 : index
    %c0_0 = arith.constant 0 : index
    %c0_1 = arith.constant 0 : index
    %0 = vector.load %arg1[%c0, %c0_0, %c0_1] : memref<1x8x32xf32, #tpu.memory_space<vmem>>, vector<1x8x32xf32>
    %1 = vector.shape_cast %0 : vector<1x8x32xf32> to vector<8x32xf32>
    %c0_2 = arith.constant 0 : index
    %c0_3 = arith.constant 0 : index
    %2 = vector.load %arg5[%c0_2, %c0_3] : memref<32x32xf32, #tpu.memory_space<vmem>>, vector<32x32xf32>
    %cst = arith.constant dense<0.000000e+00> : vector<8x32xf32>
    %3 = tpu.matmul %1, %2, %cst {dimension_numbers = #tpu.dot_dimension_numbers<[1], [0], [0], [1], [0, 0, 1, 1], [], []>, precision = #tpu.contract_precision<fp32>} : vector<8x32xf32>, vector<32x32xf32>, vector<8x32xf32> -> vector<8x32xf32>
    %c0_4 = arith.constant 0 : index
    %c0_5 = arith.constant 0 : index
    %4 = vector.load %arg6[%c0_4, %c0_5] : memref<1x32xf32, #tpu.memory_space<vmem>>, vector<1x32xf32>
    %5 = vector.broadcast %4 : vector<1x32xf32> to vector<8x32xf32>
    %6 = arith.addf %3, %5 : vector<8x32xf32>
    %c0_6 = arith.constant 0 : index
    %c0_7 = arith.constant 0 : index
    %c0_8 = arith.constant 0 : index
    %7 = vector.load %arg2[%c0_6, %c0_7, %c0_8] : memref<1x8x32xf32, #tpu.memory_space<vmem>>, vector<1x8x32xf32>
    %8 = vector.shape_cast %7 : vector<1x8x32xf32> to vector<8x32xf32>
    %c0_9 = arith.constant 0 : index
    %c0_10 = arith.constant 0 : index
    %9 = vector.load %arg7[%c0_9, %c0_10] : memref<32x32xf32, #tpu.memory_space<vmem>>, vector<32x32xf32>
    %cst_11 = arith.constant dense<0.000000e+00> : vector<8x32xf32>
    %10 = tpu.matmul %8, %9, %cst_11 {dimension_numbers = #tpu.dot_dimension_numbers<[1], [0], [0], [1], [0, 0, 1, 1], [], []>, precision = #tpu.contract_precision<fp32>} : vector<8x32xf32>, vector<32x32xf32>, vector<8x32xf32> -> vector<8x32xf32>
    %c0_12 = arith.constant 0 : index
    %c0_13 = arith.constant 0 : index
    %11 = vector.load %arg8[%c0_12, %c0_13] : memref<1x32xf32, #tpu.memory_space<vmem>>, vector<1x32xf32>
    %12 = vector.broadcast %11 : vector<1x32xf32> to vector<8x32xf32>
    %13 = arith.addf %10, %12 : vector<8x32xf32>
    %c0_14 = arith.constant 0 : index
    %c0_15 = arith.constant 0 : index
    %c0_16 = arith.constant 0 : index
    %14 = vector.load %arg3[%c0_14, %c0_15, %c0_16] : memref<1x8x32xf32, #tpu.memory_space<vmem>>, vector<1x8x32xf32>
    %15 = vector.shape_cast %14 : vector<1x8x32xf32> to vector<8x32xf32>
    %c0_17 = arith.constant 0 : index
    %c0_18 = arith.constant 0 : index
    %16 = vector.load %arg9[%c0_17, %c0_18] : memref<32x32xf32, #tpu.memory_space<vmem>>, vector<32x32xf32>
    %cst_19 = arith.constant dense<0.000000e+00> : vector<8x32xf32>
    %17 = tpu.matmul %15, %16, %cst_19 {dimension_numbers = #tpu.dot_dimension_numbers<[1], [0], [0], [1], [0, 0, 1, 1], [], []>, precision = #tpu.contract_precision<fp32>} : vector<8x32xf32>, vector<32x32xf32>, vector<8x32xf32> -> vector<8x32xf32>
    %c0_20 = arith.constant 0 : index
    %c0_21 = arith.constant 0 : index
    %18 = vector.load %arg10[%c0_20, %c0_21] : memref<1x32xf32, #tpu.memory_space<vmem>>, vector<1x32xf32>
    %19 = vector.broadcast %18 : vector<1x32xf32> to vector<8x32xf32>
    %20 = arith.addf %17, %19 : vector<8x32xf32>
    %c0_22 = arith.constant 0 : index
    %c0_23 = arith.constant 0 : index
    %c0_24 = arith.constant 0 : index
    %21 = vector.load %arg4[%c0_22, %c0_23, %c0_24] : memref<1x8x8xi32, #tpu.memory_space<vmem>>, vector<1x8x8xi32>
    %22 = vector.shape_cast %21 : vector<1x8x8xi32> to vector<8x8xi32>
    %c0_i32 = arith.constant 0 : i32
    %23 = vector.broadcast %c0_i32 : i32 to vector<8x8xi32>
    %24 = arith.cmpi eq, %22, %23 : vector<8x8xi32>
    %cst_25 = arith.constant -1.000000e+09 : f32
    %cst_26 = arith.constant 0.000000e+00 : f32
    %25 = vector.broadcast %cst_25 : f32 to vector<8x8xf32>
    %26 = vector.broadcast %cst_26 : f32 to vector<8x8xf32>
    %27 = arith.select %24, %25, %26 : vector<8x8xi1>, vector<8x8xf32>
    %28 = vector.extract_strided_slice %6 {offsets = [0, 0], sizes = [8, 8], strides = [1, 1]} : vector<8x32xf32> to vector<8x8xf32>
    %29 = vector.extract_strided_slice %13 {offsets = [0, 0], sizes = [8, 8], strides = [1, 1]} : vector<8x32xf32> to vector<8x8xf32>
    %30 = vector.extract_strided_slice %20 {offsets = [0, 0], sizes = [8, 8], strides = [1, 1]} : vector<8x32xf32> to vector<8x8xf32>
    %cst_27 = arith.constant dense<0.000000e+00> : vector<8x8xf32>
    %31 = tpu.matmul %28, %29, %cst_27 {dimension_numbers = #tpu.dot_dimension_numbers<[1], [1], [0], [0], [0, 0, 1, 0], [], []>, precision = #tpu.contract_precision<fp32>} : vector<8x8xf32>, vector<8x8xf32>, vector<8x8xf32> -> vector<8x8xf32>
    %cst_28 = arith.constant 0.353553385 : f32
    %32 = vector.broadcast %cst_28 : f32 to vector<8x8xf32>
    %33 = arith.mulf %31, %32 : vector<8x8xf32>
    %34 = arith.addf %33, %27 : vector<8x8xf32>
    %cst_29 = arith.constant dense<0xFF800000> : vector<8xf32>
    %35 = vector.multi_reduction <maximumf>, %34, %cst_29 [1] : vector<8x8xf32> to vector<8xf32>
    %36 = vector.shape_cast %35 : vector<8xf32> to vector<8x1xf32>
    %37 = vector.broadcast %36 : vector<8x1xf32> to vector<8x8xf32>
    %38 = arith.subf %34, %37 : vector<8x8xf32>
    %39 = math.exp %38 : vector<8x8xf32>
    %cst_30 = arith.constant dense<0.000000e+00> : vector<8xf32>
    %40 = vector.multi_reduction <add>, %39, %cst_30 [1] : vector<8x8xf32> to vector<8xf32>
    %41 = vector.shape_cast %40 : vector<8xf32> to vector<8x1xf32>
    %42 = vector.broadcast %41 : vector<8x1xf32> to vector<8x8xf32>
    %43 = arith.divf %39, %42 : vector<8x8xf32>
    %cst_31 = arith.constant dense<0.000000e+00> : vector<8x8xf32>
    %44 = tpu.matmul %43, %30, %cst_31 {dimension_numbers = #tpu.dot_dimension_numbers<[1], [0], [0], [1], [0, 0, 1, 1], [], []>, precision = #tpu.contract_precision<fp32>} : vector<8x8xf32>, vector<8x8xf32>, vector<8x8xf32> -> vector<8x8xf32>
    %c0_32 = arith.constant 0 : index
    %c0_33 = arith.constant 0 : index
    %45 = vector.load %arg14[%c0_32, %c0_33] : memref<8x32xf32, #tpu.memory_space<vmem>>, vector<8x8xf32>
    tpu.vector_store %arg14[%c0_32, %c0_33], %44 {strides = array<i32>} : memref<8x32xf32, #tpu.memory_space<vmem>>, vector<8x8xf32>,
    %46 = vector.extract_strided_slice %6 {offsets = [0, 8], sizes = [8, 8], strides = [1, 1]} : vector<8x32xf32> to vector<8x8xf32>
    %47 = vector.extract_strided_slice %13 {offsets = [0, 8], sizes = [8, 8], strides = [1, 1]} : vector<8x32xf32> to vector<8x8xf32>
    %48 = vector.extract_strided_slice %20 {offsets = [0, 8], sizes = [8, 8], strides = [1, 1]} : vector<8x32xf32> to vector<8x8xf32>
    %cst_34 = arith.constant dense<0.000000e+00> : vector<8x8xf32>
    %49 = tpu.matmul %46, %47, %cst_34 {dimension_numbers = #tpu.dot_dimension_numbers<[1], [1], [0], [0], [0, 0, 1, 0], [], []>, precision = #tpu.contract_precision<fp32>} : vector<8x8xf32>, vector<8x8xf32>, vector<8x8xf32> -> vector<8x8xf32>
    %cst_35 = arith.constant 0.353553385 : f32
    %50 = vector.broadcast %cst_35 : f32 to vector<8x8xf32>
    %51 = arith.mulf %49, %50 : vector<8x8xf32>
    %52 = arith.addf %51, %27 : vector<8x8xf32>
    %cst_36 = arith.constant dense<0xFF800000> : vector<8xf32>
    %53 = vector.multi_reduction <maximumf>, %52, %cst_36 [1] : vector<8x8xf32> to vector<8xf32>
    %54 = vector.shape_cast %53 : vector<8xf32> to vector<8x1xf32>
    %55 = vector.broadcast %54 : vector<8x1xf32> to vector<8x8xf32>
    %56 = arith.subf %52, %55 : vector<8x8xf32>
    %57 = math.exp %56 : vector<8x8xf32>
    %cst_37 = arith.constant dense<0.000000e+00> : vector<8xf32>
    %58 = vector.multi_reduction <add>, %57, %cst_37 [1] : vector<8x8xf32> to vector<8xf32>
    %59 = vector.shape_cast %58 : vector<8xf32> to vector<8x1xf32>
    %60 = vector.broadcast %59 : vector<8x1xf32> to vector<8x8xf32>
    %61 = arith.divf %57, %60 : vector<8x8xf32>
    %cst_38 = arith.constant dense<0.000000e+00> : vector<8x8xf32>
    %62 = tpu.matmul %61, %48, %cst_38 {dimension_numbers = #tpu.dot_dimension_numbers<[1], [0], [0], [1], [0, 0, 1, 1], [], []>, precision = #tpu.contract_precision<fp32>} : vector<8x8xf32>, vector<8x8xf32>, vector<8x8xf32> -> vector<8x8xf32>
    %c0_39 = arith.constant 0 : index
    %c8 = arith.constant 8 : index
    %63 = vector.load %arg14[%c0_39, %c8] : memref<8x32xf32, #tpu.memory_space<vmem>>, vector<8x8xf32>
    tpu.vector_store %arg14[%c0_39, %c8], %62 {strides = array<i32>} : memref<8x32xf32, #tpu.memory_space<vmem>>, vector<8x8xf32>,
    %64 = vector.extract_strided_slice %6 {offsets = [0, 16], sizes = [8, 8], strides = [1, 1]} : vector<8x32xf32> to vector<8x8xf32>
    %65 = vector.extract_strided_slice %13 {offsets = [0, 16], sizes = [8, 8], strides = [1, 1]} : vector<8x32xf32> to vector<8x8xf32>
    %66 = vector.extract_strided_slice %20 {offsets = [0, 16], sizes = [8, 8], strides = [1, 1]} : vector<8x32xf32> to vector<8x8xf32>
    %cst_40 = arith.constant dense<0.000000e+00> : vector<8x8xf32>
    %67 = tpu.matmul %64, %65, %cst_40 {dimension_numbers = #tpu.dot_dimension_numbers<[1], [1], [0], [0], [0, 0, 1, 0], [], []>, precision = #tpu.contract_precision<fp32>} : vector<8x8xf32>, vector<8x8xf32>, vector<8x8xf32> -> vector<8x8xf32>
    %cst_41 = arith.constant 0.353553385 : f32
    %68 = vector.broadcast %cst_41 : f32 to vector<8x8xf32>
    %69 = arith.mulf %67, %68 : vector<8x8xf32>
    %70 = arith.addf %69, %27 : vector<8x8xf32>
    %cst_42 = arith.constant dense<0xFF800000> : vector<8xf32>
    %71 = vector.multi_reduction <maximumf>, %70, %cst_42 [1] : vector<8x8xf32> to vector<8xf32>
    %72 = vector.shape_cast %71 : vector<8xf32> to vector<8x1xf32>
    %73 = vector.broadcast %72 : vector<8x1xf32> to vector<8x8xf32>
    %74 = arith.subf %70, %73 : vector<8x8xf32>
    %75 = math.exp %74 : vector<8x8xf32>
    %cst_43 = arith.constant dense<0.000000e+00> : vector<8xf32>
    %76 = vector.multi_reduction <add>, %75, %cst_43 [1] : vector<8x8xf32> to vector<8xf32>
    %77 = vector.shape_cast %76 : vector<8xf32> to vector<8x1xf32>
    %78 = vector.broadcast %77 : vector<8x1xf32> to vector<8x8xf32>
    %79 = arith.divf %75, %78 : vector<8x8xf32>
    %cst_44 = arith.constant dense<0.000000e+00> : vector<8x8xf32>
    %80 = tpu.matmul %79, %66, %cst_44 {dimension_numbers = #tpu.dot_dimension_numbers<[1], [0], [0], [1], [0, 0, 1, 1], [], []>, precision = #tpu.contract_precision<fp32>} : vector<8x8xf32>, vector<8x8xf32>, vector<8x8xf32> -> vector<8x8xf32>
    %c0_45 = arith.constant 0 : index
    %c16 = arith.constant 16 : index
    %81 = vector.load %arg14[%c0_45, %c16] : memref<8x32xf32, #tpu.memory_space<vmem>>, vector<8x8xf32>
    tpu.vector_store %arg14[%c0_45, %c16], %80 {strides = array<i32>} : memref<8x32xf32, #tpu.memory_space<vmem>>, vector<8x8xf32>,
    %82 = vector.extract_strided_slice %6 {offsets = [0, 24], sizes = [8, 8], strides = [1, 1]} : vector<8x32xf32> to vector<8x8xf32>
    %83 = vector.extract_strided_slice %13 {offsets = [0, 24], sizes = [8, 8], strides = [1, 1]} : vector<8x32xf32> to vector<8x8xf32>
    %84 = vector.extract_strided_slice %20 {offsets = [0, 24], sizes = [8, 8], strides = [1, 1]} : vector<8x32xf32> to vector<8x8xf32>
    %cst_46 = arith.constant dense<0.000000e+00> : vector<8x8xf32>
    %85 = tpu.matmul %82, %83, %cst_46 {dimension_numbers = #tpu.dot_dimension_numbers<[1], [1], [0], [0], [0, 0, 1, 0], [], []>, precision = #tpu.contract_precision<fp32>} : vector<8x8xf32>, vector<8x8xf32>, vector<8x8xf32> -> vector<8x8xf32>
    %cst_47 = arith.constant 0.353553385 : f32
    %86 = vector.broadcast %cst_47 : f32 to vector<8x8xf32>
    %87 = arith.mulf %85, %86 : vector<8x8xf32>
    %88 = arith.addf %87, %27 : vector<8x8xf32>
    %cst_48 = arith.constant dense<0xFF800000> : vector<8xf32>
    %89 = vector.multi_reduction <maximumf>, %88, %cst_48 [1] : vector<8x8xf32> to vector<8xf32>
    %90 = vector.shape_cast %89 : vector<8xf32> to vector<8x1xf32>
    %91 = vector.broadcast %90 : vector<8x1xf32> to vector<8x8xf32>
    %92 = arith.subf %88, %91 : vector<8x8xf32>
    %93 = math.exp %92 : vector<8x8xf32>
    %cst_49 = arith.constant dense<0.000000e+00> : vector<8xf32>
    %94 = vector.multi_reduction <add>, %93, %cst_49 [1] : vector<8x8xf32> to vector<8xf32>
    %95 = vector.shape_cast %94 : vector<8xf32> to vector<8x1xf32>
    %96 = vector.broadcast %95 : vector<8x1xf32> to vector<8x8xf32>
    %97 = arith.divf %93, %96 : vector<8x8xf32>
    %cst_50 = arith.constant dense<0.000000e+00> : vector<8x8xf32>
    %98 = tpu.matmul %97, %84, %cst_50 {dimension_numbers = #tpu.dot_dimension_numbers<[1], [0], [0], [1], [0, 0, 1, 1], [], []>, precision = #tpu.contract_precision<fp32>} : vector<8x8xf32>, vector<8x8xf32>, vector<8x8xf32> -> vector<8x8xf32>
    %c0_51 = arith.constant 0 : index
    %c24 = arith.constant 24 : index
    %99 = vector.load %arg14[%c0_51, %c24] : memref<8x32xf32, #tpu.memory_space<vmem>>, vector<8x8xf32>
    tpu.vector_store %arg14[%c0_51, %c24], %98 {strides = array<i32>} : memref<8x32xf32, #tpu.memory_space<vmem>>, vector<8x8xf32>,
    %c0_52 = arith.constant 0 : index
    %c0_53 = arith.constant 0 : index
    %100 = vector.load %arg14[%c0_52, %c0_53] : memref<8x32xf32, #tpu.memory_space<vmem>>, vector<8x32xf32>
    %c0_54 = arith.constant 0 : index
    %c0_55 = arith.constant 0 : index
    %101 = vector.load %arg11[%c0_54, %c0_55] : memref<32x32xf32, #tpu.memory_space<vmem>>, vector<32x32xf32>
    %cst_56 = arith.constant dense<0.000000e+00> : vector<8x32xf32>
    %102 = tpu.matmul %100, %101, %cst_56 {dimension_numbers = #tpu.dot_dimension_numbers<[1], [0], [0], [1], [0, 0, 1, 1], [], []>, precision = #tpu.contract_precision<fp32>} : vector<8x32xf32>, vector<32x32xf32>, vector<8x32xf32> -> vector<8x32xf32>
    %c0_57 = arith.constant 0 : index
    %c0_58 = arith.constant 0 : index
    %103 = vector.load %arg12[%c0_57, %c0_58] : memref<1x32xf32, #tpu.memory_space<vmem>>, vector<1x32xf32>
    %104 = vector.broadcast %103 : vector<1x32xf32> to vector<8x32xf32>
    %105 = arith.addf %102, %104 : vector<8x32xf32>
    %c0_59 = arith.constant 0 : index
    %c0_60 = arith.constant 0 : index
    %c0_61 = arith.constant 0 : index
    %106 = vector.load %arg13[%c0_59, %c0_60, %c0_61] : memref<1x8x32xf32, #tpu.memory_space<vmem>>, vector<1x8x32xf32>
    %107 = vector.shape_cast %106 : vector<1x8x32xf32> to vector<8x32xf32>
    %108 = vector.shape_cast %105 : vector<8x32xf32> to vector<1x8x32xf32>
    tpu.vector_store %arg13[%c0_59, %c0_60, %c0_61], %108 {strides = array<i32>} : memref<1x8x32xf32, #tpu.memory_space<vmem>>, vector<1x8x32xf32>,
    return
  }
  func.func @transform_0(%arg0: i32) -> (i32, i32, i32) {
    %c0_i32 = arith.constant 0 : i32
    %c0_i32_0 = arith.constant 0 : i32
    %c0_i32_1 = arith.constant 0 : i32
    return %arg0, %c0_i32, %c0_i32_0 : i32, i32, i32
  }
  func.func @transform_1(%arg0: i32) -> (i32, i32, i32) {
    %c0_i32 = arith.constant 0 : i32
    %c0_i32_0 = arith.constant 0 : i32
    %c0_i32_1 = arith.constant 0 : i32
    return %arg0, %c0_i32, %c0_i32_0 : i32, i32, i32
  }
  func.func @transform_2(%arg0: i32) -> (i32, i32, i32) {
    %c0_i32 = arith.constant 0 : i32
    %c0_i32_0 = arith.constant 0 : i32
    %c0_i32_1 = arith.constant 0 : i32
    return %arg0, %c0_i32, %c0_i32_0 : i32, i32, i32
  }
  func.func @transform_3(%arg0: i32) -> (i32, i32, i32) {
    %c0_i32 = arith.constant 0 : i32
    %c0_i32_0 = arith.constant 0 : i32
    %c0_i32_1 = arith.constant 0 : i32
    return %arg0, %c0_i32, %c0_i32_0 : i32, i32, i32
  }
  func.func @transform_4(%arg0: i32) -> (i32, i32) {
    %c0_i32 = arith.constant 0 : i32
    %c0_i32_0 = arith.constant 0 : i32
    %c0_i32_1 = arith.constant 0 : i32
    return %c0_i32, %c0_i32_0 : i32, i32
  }
  func.func @transform_5(%arg0: i32) -> (i32, i32) {
    %c0_i32 = arith.constant 0 : i32
    %c0_i32_0 = arith.constant 0 : i32
    %c0_i32_1 = arith.constant 0 : i32
    return %c0_i32, %c0_i32_0 : i32, i32
  }
  func.func @transform_6(%arg0: i32) -> (i32, i32) {
    %c0_i32 = arith.constant 0 : i32
    %c0_i32_0 = arith.constant 0 : i32
    %c0_i32_1 = arith.constant 0 : i32
    return %c0_i32, %c0_i32_0 : i32, i32
  }
  func.func @transform_7(%arg0: i32) -> (i32, i32) {
    %c0_i32 = arith.constant 0 : i32
    %c0_i32_0 = arith.constant 0 : i32
    %c0_i32_1 = arith.constant 0 : i32
    return %c0_i32, %c0_i32_0 : i32, i32
  }
  func.func @transform_8(%arg0: i32) -> (i32, i32) {
    %c0_i32 = arith.constant 0 : i32
    %c0_i32_0 = arith.constant 0 : i32
    %c0_i32_1 = arith.constant 0 : i32
    return %c0_i32, %c0_i32_0 : i32, i32
  }
  func.func @transform_9(%arg0: i32) -> (i32, i32) {
    %c0_i32 = arith.constant 0 : i32
    %c0_i32_0 = arith.constant 0 : i32
    %c0_i32_1 = arith.constant 0 : i32
    return %c0_i32, %c0_i32_0 : i32, i32
  }
  func.func @transform_10(%arg0: i32) -> (i32, i32) {
    %c0_i32 = arith.constant 0 : i32
    %c0_i32_0 = arith.constant 0 : i32
    %c0_i32_1 = arith.constant 0 : i32
    return %c0_i32, %c0_i32_0 : i32, i32
  }
  func.func @transform_11(%arg0: i32) -> (i32, i32) {
    %c0_i32 = arith.constant 0 : i32
    %c0_i32_0 = arith.constant 0 : i32
    %c0_i32_1 = arith.constant 0 : i32
    return %c0_i32, %c0_i32_0 : i32, i32
  }
  func.func @transform_12(%arg0: i32) -> (i32, i32, i32) {
    %c0_i32 = arith.constant 0 : i32
    %c0_i32_0 = arith.constant 0 : i32
    %c0_i32_1 = arith.constant 0 : i32
    return %arg0, %c0_i32, %c0_i32_0 : i32, i32, i32
  }
}

</mosaic_0001>

<bundles_post_ra>
// kernel: tpu_custom_call.1
= control target key start
LH: loop header
LB: loop body
LE: loop exit
PB: predicated region body
PF: predicated region fallthrough
CT: control target
= control target key end

     0   :  { %s8734_s0 = inlined_call_operand.hbm [shape: f32[2,8,32], index: 0, kind: input, shape index: {}]   ;;  %s8735_s1 = inlined_call_operand.hbm [shape: f32[2,8,32], index: 1, kind: input, shape index: {}]   ;;  %s8736_s2 = inlined_call_operand.hbm [shape: f32[2,8,32], index: 2, kind: input, shape index: {}]   ;;  %s8737_s3 = inlined_call_operand.hbm [shape: s32[2,8,8], index: 3, kind: input, shape index: {}]   ;;  %s8738_s4 = inlined_call_operand.hbm [shape: f32[32,32], index: 4, kind: input, shape index: {}]   ;;  %s8739_s5 = inlined_call_operand.vmem [shape: f32[1,32], index: 5, kind: input, shape index: {}]   ;;  %s8740_s6 = inlined_call_operand.hbm [shape: f32[32,32], index: 6, kind: input, shape index: {}]   ;;  %s8741_s7 = inlined_call_operand.vmem [shape: f32[1,32], index: 7, kind: input, shape index: {}]   ;;  %s8742_s8 = inlined_call_operand.hbm [shape: f32[32,32], index: 8, kind: input, shape index: {}]   ;;  %s8743_s9 = inlined_call_operand.vmem [shape: f32[1,32], index: 9, kind: input, shape index: {}]   ;;  %s8744_s10 = inlined_call_operand.vmem [shape: f32[32,32], index: 10, kind: input, shape index: {}]   ;;  %s8745_s11 = inlined_call_operand.vmem [shape: f32[1,32], index: 11, kind: input, shape index: {}]   ;;  %s8746_s12 = inlined_call_operand.hbm [shape: f32[2,8,32], index: 12, kind: output, shape index: {}]  }
   0x1   :  { %8768 = sst [smem:[#allocation27_spill]] %s8735_s1 }
   0x2   :  { %8769 = sst [smem:[#allocation28_spill]] %s8738_s4 }
   0x3   :  { %8770 = sst [smem:[#allocation29_spill]] %s8740_s6 }
   0x4   :  { %8771 = sst [smem:[#allocation30_spill]] %s8744_s10 }
   0x5   :  { %8772 = sst [smem:[#allocation31_spill]] %s8745_s11 }
   0x6   :  { %8773 = sst [smem:[#allocation32_spill]] %s8746_s12 }
   0x7   :  { %17 = vsyncpa [#allocation4], 0 }
   0x8   :  { %19 = vsyncpa [#allocation4 + $0x1], 0 }
   0x9   :  { %20 = vsyncpa [#allocation7], 0 }
   0xa   :  { %22 = vsyncpa [#allocation7 + $0x1], 0 }
   0xb   :  { %23 = vsyncpa [#allocation10], 0 }
   0xc   :  { %25 = vsyncpa [#allocation10 + $0x1], 0 }
   0xd   :  { %26 = vsyncpa [#allocation13], 0 }
   0xe   :  { %27 = vsyncpa [#allocation5], 0 }
   0xf   :  { %29 = vsyncpa [#allocation5 + $0x1], 0  ;;  %s7964_s21 = smov 0   ;;  %s7966_s22 = smov 0  }
  0x10   :  { %s7968_s23 = smov 0   ;;  %s7970_s24 = smov 0  }
  0x11 LB: > { %8774 = sst [smem:[#allocation22_spill]] %s7866_s21  ;;  %s7985_s25 = sadd.s32 4294967295, %s7878_s24   ;;  %s7878_s24 = sphi %s7970_s24, %s8815_s24   ;;  %s7874_s23 = sphi %s7968_s23, %s8819_s23   ;;  %s7870_s22 = sphi %s7966_s22, %s8818_s22   ;;  %s7866_s21 = sphi %s7964_s21, %s8817_s21  }
  0x12   : > { %s6455_s26 = sadd.s32 4294967294, %s7878_s24   ;;  %p55_p0 = scmp.ne.s32.totalorder %s7870_s22, %s7866_s21 }
  0x13   : > { %p8748_p1 = scmp.eq.s32.totalorder %s7985_s25, 0  ;;  %p331_p3 = scmp.eq.s32.totalorder %s6455_s26, 1 }
  0x14   : > { %p6456_p5 = scmp.ge.s32.totalorder %s7878_s24, 1  ;;  %p338_p7 = scmp.lt.s32.totalorder %s7878_s24, 3 }
  0x15   : > { %p7994_p4 = por %p8748_p1, %p55_p0  ;;  %p7999_p6 = por %p331_p3, %p55_p0 }
  0x16   : > { %p8004_p8 = pnand %p6456_p5, %p338_p7  ;;  %s7880_s30 = smov [#allocation11]  }
  0x17   : > { %s8775_s27 = scalar_select %p7994_p4, 1, 0 }
  0x18   : > { %s8776_s28 = scalar_select %p7999_p6, 1, 0 }
  0x19   : > { %s8778_s29 = scalar_select %p8004_p8, 1, 0 }
  0x1a   : > { %8777 = sst [smem:[#allocation23_spill]] %s8776_s28  ;;  %s350_s13 = sshll.u32 %s7880_s30, 4  ;;  %s8008_s13 = int_to_ptr.vmem [resolvable:$true] %s350_s13 }
  0x1b   : > { %p7495_p9 = pneg %p8004_p8  ;;  %s7881_s15 = smov [#allocation12]  }
  0x1c   : > { %s366_s16 = sshll.u32 %s7881_s15, 4  ;;  %s8780_s4 = sld [smem:[#allocation28_spill]]  ;;  %s8019_s16 = int_to_ptr.vmem [resolvable:$true] %s366_s16 }
  0x1d   : > { %p8015_p11 = pnand %p7495_p9, %p8748_p1 }
  0x1f   : > { %s8779_s14 = scalar_select %p8015_p11, 1, 0 }
  0x20   : > { %p8029_p13 = pneg %p8015_p11 }
  0x22   : > { %s7592_s19 = scalar_lea.hbm %s8780_s4, 512 }
  0x23   : > { %p7593_p12 = scmp.ne.s32.totalorder %s8780_s4, %s7592_s19  ;;  %p7599_p5 = scmp.lt.u32.totalorder %s7592_s19, %s8780_s4 }
  0x24   : > { %s8781_s30 = scalar_select %p8029_p13, 1, 0 }
  0x25   : > { %p7595_p0 = pnand %p8029_p13, %p7593_p12 }
  0x27   : > { %p7596_p3 = pneg %p7595_p0 }
  0x29   : > { %p7601_p7 = pnand %p7599_p5, %p7596_p3 }
  0x2b   : > { %7604 = shalt.err (!%p7601_p7)
}
  0x2c   : > { %s7605_s17 = scalar_lea.vmem %s8008_s13, 512  ;;  %p7613_p2 = scmp.lt.s32.totalorder %s8008_s13, %s8008_s13 }
  0x2d   : > { %p7606_p9 = scmp.ne.s32.totalorder %s8008_s13, %s7605_s17  ;;  %p7614_p6 = scmp.lt.s32.totalorder %s7605_s17, %s7605_s17 }
  0x2f   : > { %p7608_p10 = pnand %p7606_p9, %p8029_p13  ;;  %p7615_p12 = por %p7614_p6, %p7613_p2 }
  0x31   : > { %p7609_p1 = pneg %p7608_p10 }
  0x33   : > { %p7616_p0 = pnand %p7615_p12, %p7609_p1 }
  0x35   : > { %7619 = shalt.err (!%p7616_p0)
}
  0x36   : > { %s8753_s18 = smov 128   ;;  %s8754_s28 = smov 8  }
  0x37   : > { %7498 = dma.hbm_to_vmem [thread:$0]  (!%p8015_p11), %s8780_s4, 512, %s8008_s13, [#allocation10], %s8753_s18, %s8753_s18, %s8754_s28  }
  0x38   : > { %s8782_s6 = sld [smem:[#allocation29_spill]] }
  0x3e   : > { %s7620_s17 = scalar_lea.hbm %s8782_s6, 512 }
  0x3f   : > { %p7621_p1 = scmp.ne.s32.totalorder %s8782_s6, %s7620_s17  ;;  %p7627_p10 = scmp.lt.u32.totalorder %s7620_s17, %s8782_s6 }
  0x41   : > { %p7623_p2 = pnand %p7621_p1, %p8029_p13 }
  0x43   : > { %p7624_p6 = pneg %p7623_p2 }
  0x45   : > { %p7629_p3 = pnand %p7627_p10, %p7624_p6 }
  0x47   : > { %7632 = shalt.err (!%p7629_p3)
}
  0x48   : > { %s7633_s13 = scalar_lea.vmem %s8019_s16, 512  ;;  %p7641_p12 = scmp.lt.s32.totalorder %s8019_s16, %s8019_s16 }
  0x49   : > { %p7634_p5 = scmp.ne.s32.totalorder %s8019_s16, %s7633_s13  ;;  %p7642_p0 = scmp.lt.s32.totalorder %s7633_s13, %s7633_s13 }
  0x4b   : > { %p7636_p7 = pnand %p7634_p5, %p8029_p13  ;;  %p7643_p1 = por %p7642_p0, %p7641_p12 }
  0x4d   : > { %p7637_p9 = pneg %p7636_p7 }
  0x4f   : > { %p7644_p2 = pnand %p7643_p1, %p7637_p9 }
  0x51   : > { %7647 = shalt.err (!%p7644_p2)
}
  0x52   : > { %7501 = dma.hbm_to_vmem [thread:$0]  (!%p8015_p11), %s8782_s6, 512, %s8019_s16, [#allocation13], %s8753_s18, %s8753_s18, %s8754_s28  }
  0x53   : > { %s8080_s12 = sadd.s32 1, %s7878_s24   ;;  %s42_s21 = sadd.s32 1, %s7874_s23 }
  0x54   : > { %8783 = sst [smem:[#allocation24_spill]] %s8080_s12  ;;  %s39_s19 = ssub.s32 %s7878_s24, %s8080_s12 }
  0x55   : > { %p49_p6 = scmp.ne.s32.totalorder %s7874_s23, %s7870_s22  ;;  %p40_p10 = scmp.eq.s32.totalorder %s39_s19, 0 }
  0x56   : > { %p50_p3 = scmp.eq.s32.totalorder %s7878_s24, 0  ;;  %p8784_p5 = scmp.eq.s32.totalorder %s7985_s25, 1 }
  0x57   : > { %p7525_p9 = scmp.lt.s32.totalorder %s7878_s24, 2  ;;  %s8752_s15 = sand.u32 1, %s7874_s23  }
  0x58   : > { %p8090_p7 = por %p8784_p5, %p49_p6  ;;  %p51_p12 = por %p50_p3, %p49_p6 }
  0x59   : > { %s8096_s26 = scalar_select %p40_p10, %s7874_s23, %s42_s21  }
  0x5a   : > { %s8785_s20 = scalar_select %p8090_p7, 1, 0 }
  0x5b   : > { %8787 = sst [smem:[#allocation26_spill]] %s8096_s26  ;;  %s8101_s16 = sshll.u32 %s8752_s15, 3 }
  0x5c   : > { %8786 = sst [smem:[#allocation25_spill]] %s8785_s20  ;;  %s8104_s17 = sshll.u32 %s7878_s24, 7 }
  0x5d   : > { %p8106_p0 = pnand %p7525_p9, %p51_p12  ;;  %s8759_s10 = sand.u32 1, %s7878_s24  }
  0x5e   : > { %s8789_s1 = sld [smem:[#allocation27_spill]]  ;;  %s427_s15 = scalar_lea.vmem [#allocation6], %s8101_s16 }
  0x5f   : > { %s8788_s13 = scalar_select %p8106_p0, 1, 0 }
  0x60   : > { %s434_s18 = sshll.u32 %s427_s15, 4  ;;  %s8122_s28 = scalar_lea.sflag [#allocation7], %s8759_s10  ;;  %s8118_s18 = int_to_ptr.vmem [resolvable:$true] %s434_s18 }
  0x61   : > { %p8128_p2 = pneg %p8106_p0 }
  0x64   : > { %s8115_s21 = scalar_lea.hbm %s8789_s1, %s8104_s17  ;;  %s7653_s15 = scalar_lea.hbm %s8789_s1, 256 }
  0x65   : > { %s7648_s4 = scalar_lea.hbm %s8115_s21, 128  ;;  %p7654_p3 = scmp.lt.u32.totalorder %s8115_s21, %s8789_s1 }
  0x66   : > { %p7649_p1 = scmp.ne.s32.totalorder %s8115_s21, %s7648_s4  ;;  %p7655_p5 = scmp.lt.u32.totalorder %s7653_s15, %s7648_s4 }
  0x67   : > { %p7657_p12 = scmp.lt.u32.totalorder %s7648_s4, %s8115_s21 }
  0x68   : > { %p7651_p6 = pnand %p8128_p2, %p7649_p1  ;;  %p7656_p9 = por %p7655_p5, %p7654_p3 }
  0x6a   : > { %p7652_p10 = pneg %p7651_p6  ;;  %p7658_p7 = por %p7657_p12, %p7656_p9 }
  0x6c   : > { %p7659_p4 = pnand %p7658_p7, %p7652_p10 }
  0x6e   : > { %7662 = shalt.err (!%p7659_p4)
}
  0x6f   : > { %s7663_s10 = scalar_lea.vmem %s8118_s18, 128  ;;  %s7884_s11 = smov [#allocation6]  }
  0x70   : > { %p7664_p1 = scmp.ne.s32.totalorder %s8118_s18, %s7663_s10  ;;  %s7668_s19 = sshll.u32 %s7884_s11, 4  ;;  %s7669_s19 = int_to_ptr.vmem [resolvable:$false] %s7668_s19 }
  0x71   : > { %s7670_s12 = scalar_lea.vmem %s7669_s19, 256  ;;  %p7671_p11 = scmp.lt.s32.totalorder %s8118_s18, %s7669_s19 }
  0x72   : > { %p7666_p6 = pnand %p7664_p1, %p8128_p2  ;;  %p7672_p13 = scmp.lt.s32.totalorder %s7670_s12, %s7663_s10 }
  0x74   : > { %p7667_p8 = pneg %p7666_p6  ;;  %p7673_p3 = por %p7672_p13, %p7671_p11 }
  0x76   : > { %p7674_p5 = pnand %p7673_p3, %p7667_p8 }
  0x78   : > { %7677 = shalt.err (!%p7674_p5)
}
  0x79   : > { %7511 = dma.hbm_to_vmem [thread:$0]  (!%p8106_p0), %s8115_s21, 128, %s8118_s18, %s8122_s28  }
  0x7a   : > { %s7885_s4 = smov [#allocation14]   ;;  %s7678_s11 = scalar_lea.hbm %s8742_s8, 512 }
  0x7b   : > { %s382_s26 = sshll.u32 %s7885_s4, 4  ;;  %p7679_p4 = scmp.ne.s32.totalorder %s8742_s8, %s7678_s11  ;;  %s383_s26 = int_to_ptr.vmem [resolvable:$true] %s382_s26 }
  0x7c   : > { %p8791_p8 = scmp.ne.s32.totalorder %s8781_s30, 0  ;;  %p7685_p7 = scmp.lt.u32.totalorder %s7678_s11, %s8742_s8 }
  0x7e   : > { %p7681_p11 = pnand %p7679_p4, %p8791_p8 }
  0x80   : > { %p7682_p13 = pneg %p7681_p11 }
  0x82   : > { %p7687_p10 = pnand %p7685_p7, %p7682_p13 }
  0x84   : > { %7690 = shalt.err (!%p7687_p10)
}
  0x85   : > { %s7691_s18 = scalar_lea.vmem %s383_s26, 512  ;;  %p7699_p6 = scmp.lt.s32.totalorder %s383_s26, %s383_s26 }
  0x86   : > { %p7692_p9 = scmp.ne.s32.totalorder %s383_s26, %s7691_s18  ;;  %p7700_p3 = scmp.lt.s32.totalorder %s7691_s18, %s7691_s18 }
  0x88   : > { %p7694_p12 = pnand %p7692_p9, %p8791_p8  ;;  %p7701_p5 = por %p7700_p3, %p7699_p6 }
  0x8a   : > { %p7695_p1 = pneg %p7694_p12 }
  0x8c   : > { %p7702_p0 = pnand %p7701_p5, %p7695_p1 }
  0x8e   : > { %7705 = shalt.err (!%p7702_p0)
}
  0x8f   : > { %p8792_p4 = scmp.ne.s32.totalorder %s8779_s14, 0  ;;  %s8793_s1 = smov 8  }
  0x90   : > { %s8794_s20 = smov 128   ;;  %s8177_s11 = scalar_lea.hbm %s8734_s0, %s8104_s17 }
  0x91   : > { %7504 = dma.hbm_to_vmem [thread:$0]  (!%p8792_p4), %s8742_s8, 512, %s383_s26, [#allocation13], %s8794_s20, %s8794_s20, %s8793_s1  }
  0x92   : > { %s409_s14 = scalar_lea.vmem [#allocation3], %s8101_s16  ;;  %s8795_s10 = sand.u32 1, %s7874_s23  }
  0x93   : > { %s416_s19 = sshll.u32 %s409_s14, 4  ;;  %s406_s12 = scalar_lea.sflag [#allocation4], %s8795_s10  ;;  %s417_s19 = int_to_ptr.vmem [resolvable:$true] %s416_s19 }
  0x94   : > { %s7706_s18 = scalar_lea.hbm %s8177_s11, 128  ;;  %s7711_s20 = scalar_lea.hbm %s8734_s0, 256 }
  0x95   : > { %p7707_p0 = scmp.ne.s32.totalorder %s8177_s11, %s7706_s18  ;;  %p7712_p13 = scmp.lt.u32.totalorder %s8177_s11, %s8734_s0 }
  0x96   : > { %p7713_p7 = scmp.lt.u32.totalorder %s7711_s20, %s7706_s18  ;;  %p7715_p9 = scmp.lt.u32.totalorder %s7706_s18, %s8177_s11 }
  0x97   : > { %p7709_p8 = pnand %p7707_p0, %p8128_p2 }
  0x98   : > { %p7714_p10 = por %p7713_p7, %p7712_p13 }
  0x99   : > { %p7710_p11 = pneg %p7709_p8 }
  0x9a   : > { %p7716_p12 = por %p7715_p9, %p7714_p10 }
  0x9c   : > { %p7717_p1 = pnand %p7716_p12, %p7710_p11 }
  0x9e   : > { %7720 = shalt.err (!%p7717_p1)
}
  0x9f   : > { %s7721_s30 = scalar_lea.vmem %s417_s19, 128  ;;  %s7886_s15 = smov [#allocation3]  }
  0xa0   : > { %p7722_p6 = scmp.ne.s32.totalorder %s417_s19, %s7721_s30  ;;  %s7726_s14 = sshll.u32 %s7886_s15, 4  ;;  %s7727_s14 = int_to_ptr.vmem [resolvable:$false] %s7726_s14 }
  0xa1   : > { %s7728_s10 = scalar_lea.vmem %s7727_s14, 256  ;;  %p7729_p4 = scmp.lt.s32.totalorder %s417_s19, %s7727_s14 }
  0xa2   : > { %p7724_p3 = pnand %p7722_p6, %p8128_p2  ;;  %p7730_p0 = scmp.lt.s32.totalorder %s7728_s10, %s7721_s30 }
  0xa4   : > { %p7725_p5 = pneg %p7724_p3  ;;  %p7731_p8 = por %p7730_p0, %p7729_p4 }
  0xa6   : > { %p7732_p7 = pnand %p7731_p8, %p7725_p5 }
  0xa8   : > { %7735 = shalt.err (!%p7732_p7)
}
  0xa9   : > { %p8796_p13 = scmp.ne.s32.totalorder %s8788_s13, 0  ;;  %s8203_s1 = scalar_lea.hbm %s8736_s2, %s8104_s17 }
  0xaa   : > { %s445_s20 = scalar_lea.vmem [#allocation8], %s8101_s16  ;;  %s7736_s4 = scalar_lea.hbm %s8203_s1, 128 }
  0xab   : > { %7508 = dma.hbm_to_vmem [thread:$0]  (!%p8796_p13), %s8177_s11, 128, %s417_s19, %s406_s12  }
  0xac   : > { %s452_s21 = sshll.u32 %s445_s20, 4  ;;  %p7737_p11 = scmp.ne.s32.totalorder %s8203_s1, %s7736_s4  ;;  %s453_s21 = int_to_ptr.vmem [resolvable:$true] %s452_s21 }
  0xad   : > { %s7741_s11 = scalar_lea.hbm %s8736_s2, 256  ;;  %p7742_p12 = scmp.lt.u32.totalorder %s8203_s1, %s8736_s2 }
  0xae   : > { %p7739_p10 = pnand %p7737_p11, %p8128_p2  ;;  %p7743_p1 = scmp.lt.u32.totalorder %s7741_s11, %s7736_s4 }
  0xaf   : > { %p7745_p3 = scmp.lt.u32.totalorder %s7736_s4, %s8203_s1 }
  0xb0   : > { %p7740_p9 = pneg %p7739_p10  ;;  %p7744_p6 = por %p7743_p1, %p7742_p12 }
  0xb2   : > { %p7746_p5 = por %p7745_p3, %p7744_p6 }
  0xb4   : > { %p7747_p4 = pnand %p7746_p5, %p7740_p9 }
  0xb6   : > { %7750 = shalt.err (!%p7747_p4)
}
  0xb7   : > { %s7751_s14 = scalar_lea.vmem %s453_s21, 128  ;;  %s7887_s10 = smov [#allocation8]  }
  0xb8   : > { %p7752_p0 = scmp.ne.s32.totalorder %s453_s21, %s7751_s14  ;;  %s7756_s18 = sshll.u32 %s7887_s10, 4  ;;  %s7757_s18 = int_to_ptr.vmem [resolvable:$false] %s7756_s18 }
  0xb9   : > { %s7758_s26 = scalar_lea.vmem %s7757_s18, 256  ;;  %p7759_p11 = scmp.lt.s32.totalorder %s453_s21, %s7757_s18 }
  0xba   : > { %p7754_p8 = pnand %p7752_p0, %p8128_p2  ;;  %p7760_p10 = scmp.lt.s32.totalorder %s7758_s26, %s7751_s14 }
  0xbc   : > { %p7755_p7 = pneg %p7754_p8  ;;  %p7761_p13 = por %p7760_p10, %p7759_p11 }
  0xbe   : > { %p7762_p1 = pnand %p7761_p13, %p7755_p7 }
  0xc0   : > { %7765 = shalt.err (!%p7762_p1)
}
  0xc1   : > { %p8797_p12 = scmp.ne.s32.totalorder %s8788_s13, 0  ;;  %s8228_s30 = scalar_lea.hbm %s8737_s3, %s8104_s17 }
  0xc2   : > { %s463_s15 = scalar_lea.vmem [#allocation9], %s8101_s16  ;;  %s8798_s19 = sand.u32 1, %s7878_s24  }
  0xc3   : > { %7514 = dma.hbm_to_vmem [thread:$0]  (!%p8797_p12), %s8203_s1, 128, %s453_s21, %s8122_s28  }
  0xc4   : > { %s470_s11 = sshll.u32 %s463_s15, 4  ;;  %s460_s12 = scalar_lea.sflag [#allocation10], %s8798_s19  ;;  %s471_s11 = int_to_ptr.vmem [resolvable:$true] %s470_s11 }
  0xc5   : > { %s7766_s14 = scalar_lea.hbm %s8228_s30, 128  ;;  %s7771_s21 = scalar_lea.hbm %s8737_s3, 256 }
  0xc6   : > { %p7767_p13 = scmp.ne.s32.totalorder %s8228_s30, %s7766_s14  ;;  %p7772_p3 = scmp.lt.u32.totalorder %s8228_s30, %s8737_s3 }
  0xc7   : > { %p7773_p5 = scmp.lt.u32.totalorder %s7771_s21, %s7766_s14  ;;  %p7775_p0 = scmp.lt.u32.totalorder %s7766_s14, %s8228_s30 }
  0xc8   : > { %p7769_p9 = pnand %p7767_p13, %p8128_p2 }
  0xc9   : > { %p7774_p4 = por %p7773_p5, %p7772_p3 }
  0xca   : > { %p7770_p6 = pneg %p7769_p9 }
  0xcb   : > { %p7776_p8 = por %p7775_p0, %p7774_p4 }
  0xcd   : > { %p7777_p7 = pnand %p7776_p8, %p7770_p6 }
  0xcf   : > { %7780 = shalt.err (!%p7777_p7)
}
  0xd0   : > { %s7781_s16 = scalar_lea.vmem %s471_s11, 128  ;;  %s7888_s18 = smov [#allocation9]  }
  0xd1   : > { %p7782_p11 = scmp.ne.s32.totalorder %s471_s11, %s7781_s16  ;;  %s7786_s26 = sshll.u32 %s7888_s18, 4  ;;  %s7787_s26 = int_to_ptr.vmem [resolvable:$false] %s7786_s26 }
  0xd2   : > { %s7788_s20 = scalar_lea.vmem %s7787_s26, 256  ;;  %p7789_p13 = scmp.lt.s32.totalorder %s471_s11, %s7787_s26 }
  0xd3   : > { %p7784_p10 = pnand %p7782_p11, %p8128_p2  ;;  %p7790_p9 = scmp.lt.s32.totalorder %s7788_s20, %s7781_s16 }
  0xd5   : > { %p7785_p1 = pneg %p7784_p10  ;;  %p7791_p12 = por %p7790_p9, %p7789_p13 }
  0xd7   : > { %p7792_p3 = pnand %p7791_p12, %p7785_p1 }
  0xd9   : > { %7795 = shalt.err (!%p7792_p3)
}
  0xda   : > { %p8799_p5 = scmp.ne.s32.totalorder %s8788_s13, 0  ;;  %p8800_p6 = scmp.ne.s32.totalorder %s8778_s29, 0 }
  0xdb   : > { %s8253_s6 = sand.u32 (!%p8800_p6), 1, %s7870_s22   ;;  %p8801_p2 = scmp.ne.s32.totalorder (!%p8800_p6), %s8775_s27, 0 }
  0xdc   : > { %7517 = dma.hbm_to_vmem [thread:$0]  (!%p8799_p5), %s8228_s30, 128, %s471_s11, %s460_s12  }
  0xdd   : > { %479 = sbr.rel (%p8800_p6) target bundleno = 1981 (0x7bd), region = 68  ;;  %s8256_s4 = sshll.u32 (!%p8800_p6), %s8253_s6, 3 }
  0xde   : > { %s482_s15 = scalar_lea.sflag (!%p8800_p6), [#allocation4], %s8253_s6  ;;  %s485_s19 = scalar_lea.vmem (!%p8800_p6), [#allocation3], %s8256_s4 }
  0xe4   : > { %7841 = dma.done.wait (%p8801_p2), %s482_s15, 128  }
  0xe5   : > { %7843 = vsyncadd (%p8801_p2), %s482_s15, 4294967168  ;;  %s490_s29 = sand.u32 1, %s7985_s25   ;;  %s494_s30 = scalar_lea.vmem [#allocation6], %s8256_s4 }
  0xe6   : > { %s491_s13 = scalar_lea.sflag [#allocation7], %s490_s29 }
  0xe7   : > { %7845 = dma.done.wait (%p8801_p2), %s491_s13, 256  }
  0xe8   : > { %7847 = vsyncadd (%p8801_p2), %s491_s13, 4294967040  ;;  %s503_s11 = scalar_lea.vmem [#allocation8], %s8256_s4  ;;  %s509_s12 = scalar_lea.sflag [#allocation10], %s490_s29 }
  0xe9   : > { %s512_s14 = scalar_lea.vmem [#allocation9], %s8256_s4 }
  0xea   : > { %7849 = dma.done.wait (%p8801_p2), %s509_s12, 128  }
  0xeb   : > { %7851 = vsyncadd (%p8801_p2), %s509_s12, 4294967168  ;;  %p8802_p12 = scmp.eq.s32.totalorder %s7985_s25, 0 }
  0xed   : > { %7853 = dma.done.wait (%p8802_p12), [#allocation10], 512   ;;  %p8803_p4 = pmov %p8802_p12 }
  0xef   : > { %7855 = vsyncadd (%p8803_p4), [#allocation10], 4294966784  ;;  %p8804_p0 = pmov %p8803_p4 }
  0xf1   : > { %7857 = dma.done.wait (%p8804_p0), [#allocation13], 1024   ;;  %p8805_p8 = pmov %p8804_p0 }
  0xf2   : > { %v7889_v0 = vmov 0.0|0.0   ;;  %vm7890_vm0 = vmmov 0   ;;  %v7891_v1 = vmov 0.0   ;;  %vm592_vm1 = vcmask 261120   ;;  %v581_v2 = vld [vmem:[#allocation11] sm:$0xff]  ;;  %v582_v3 = vld [vmem:[#allocation11 + $0x8] sm:$0xff] }
  0xf3   : > { %7859 = vsyncadd (%p8805_p8), [#allocation13], 4294966272  ;;  %7206 = vmatprep.subr.bf16.mxu1 %v7889_v0  ;;  %7224 = vmatprep.subr.bf16.mxu0 %v7889_v0  ;;  %v583_v4 = vld [vmem:[#allocation11 + $0x10] sm:$0xff]  ;;  %v597_v5 = vand.u32 4294901760, %v581_v2  ;;  %v600_v6 = vand.u32 4294901760, %v582_v3  ;;  %v584_v7 = vld [vmem:[#allocation11 + $0x18] sm:$0xff] }
  0xf4   : > { %6710 = vmatprep.mubr.msk.f32.mxu1 %vm7890_vm0, %v7891_v1  ;;  %6743 = vmatprep.mubr.msk.f32.mxu0 %vm7890_vm0, %v7891_v1  ;;  %v603_v8 = vand.u32 4294901760, %v583_v4  ;;  %v580_v9 = vld [vmem:[%s485_s19] sm:$0xff]  ;;  %v606_v10 = vand.u32 4294901760, %v584_v7  ;;  %v1081_v39 = vld [vmem:[%s494_s30] sm:$0xff]  ;;  %s7892_s1 = smov 112   ;;  %s7893_s21 = smov 120  }
  0xf5   : > { %v594_v11 = vsel %vm592_vm1, %v580_v9, 0  ;;  %v7207_v12 = vpack.c.bf16 %v600_v6, %v597_v5  ;;  %v8293_v13 = vsub.f32 %v581_v2, %v597_v5  ;;  %v8295_v14 = vsub.f32 %v582_v3, %v600_v6  ;;  %v1082_v37 = vld [vmem:[#allocation12] sm:$0xff]  ;;  %v1083_v38 = vld [vmem:[#allocation12 + $0x8] sm:$0xff]  ;;  %v1084_v45 = vld [vmem:[#allocation12 + $0x10] sm:$0xff]  ;;  %s7894_s16 = smov 104   ;;  %s7895_s20 = smov 8  }
  0xf6   : > { %v8297_v15 = vsub.f32 %v583_v4, %v603_v8  ;;  %v8299_v16 = vsub.f32 %v584_v7, %v606_v10  ;;  %v8301_v17 = vand.u32 4294901760, %v594_v11  ;;  %v8303_v18 = vpack.c.bf16 %v606_v10, %v603_v8  ;;  %v1085_v46 = vld [vmem:[#allocation12 + $0x18] sm:$0xff]  ;;  %s7896_s15 = smov 16   ;;  %s8806_s13 = sld [smem:[#allocation30_spill]] }
  0xf7   : > { %7208 = vmatpush3.bf16.msra.mxu1 %v7207_v12  ;;  %7226 = vmatpush3.bf16.msra.mxu0 %v7207_v12  ;;  %v678_v19 = vand.u32 4294901760, %v8293_v13  ;;  %v685_v20 = vand.u32 4294901760, %v8295_v14  ;;  %v1097_v42 = vand.u32 4294901760, %v1082_v37  ;;  %v1100_v43 = vand.u32 4294901760, %v1083_v38  ;;  %s6483_s18 = sshll.u32 %s7985_s25, 7  ;;  %s579_s26 = scalar_lea.vmem [#allocation15], %s8256_s4 }
  0xf8   : > { %v692_v21 = vand.u32 4294901760, %v8297_v15  ;;  %7209 = vmatprep.subr.bf16.mxu1 %v7889_v0  ;;  %7227 = vmatprep.subr.bf16.mxu0 %v7889_v0  ;;  %v8311_v22 = vsub.f32 %v594_v11, %v8301_v17  ;;  %v699_v23 = vand.u32 4294901760, %v8299_v16  ;;  %v1094_v44 = vsel %vm592_vm1, %v1081_v39, 0  ;;  %s8809_s29 = sld [smem:[#allocation32_spill]]  ;;  %s7898_s25 = smov [#allocation15]  }
  0xf9   : > { %v679_v24 = vsub.f32 %v8293_v13, %v678_v19  ;;  %v686_v25 = vsub.f32 %v8295_v14, %v685_v20  ;;  %v7231_v31 = vpack.c.bf16 %v685_v20, %v678_v19  ;;  %v7219_v47 = vpack.c.bf16 %v8295_v14, %v8293_v13  ;;  %v1583_v19 = vld [vmem:[#allocation14 + $0x8] sm:$0xff]  ;;  %s7800_s4 = sshll.u32 %s7898_s25, 4  ;;  %s7801_s4 = int_to_ptr.vmem [resolvable:$false] %s7800_s4 }
  0xfa   : > { %v693_v26 = vsub.f32 %v8297_v15, %v692_v21  ;;  %v667_v27 = vand.u32 4294901760, %v8311_v22  ;;  %v700_v28 = vsub.f32 %v8299_v16, %v699_v23  ;;  %v7234_v40 = vpack.c.bf16 %v699_v23, %v692_v21  ;;  %v1581_v20 = vld [vmem:[%s503_s11] sm:$0xff]  ;;  %s6278_s11 = scalar_lea.sflag [#allocation5], %s8253_s6 }
  0xfb   : > { %7211 = vmatpush3.bf16.msra.mxu1 %v8303_v18  ;;  %7229 = vmatpush3.bf16.msra.mxu0 %v8303_v18  ;;  %v680_v29 = vand.u32 4294901760, %v679_v24  ;;  %v687_v30 = vand.u32 4294901760, %v686_v25  ;;  %v8336_v48 = vand.u32 4294901760, %v1094_v44  ;;  %v8338_v49 = vsub.f32 %v1082_v37, %v1097_v42 }
  0xfc   : > { %v668_v32 = vsub.f32 %v8311_v22, %v667_v27  ;;  %7212 = vmatprep.subr.bf16.mxu1 %v7889_v0  ;;  %7230 = vmatprep.subr.bf16.mxu0 %v7889_v0  ;;  %v694_v34 = vand.u32 4294901760, %v693_v26  ;;  %v701_v35 = vand.u32 4294901760, %v700_v28  ;;  %v8340_v50 = vsub.f32 %v1083_v38, %v1100_v43  ;;  %v1584_v28 = vld [vmem:[#allocation14 + $0x10] sm:$0xff] }
  0xfd   : > { %v7213_v33 = vpack.c.bf16 %v687_v30, %v680_v29  ;;  %v1103_v51 = vand.u32 4294901760, %v1084_v45  ;;  %v1106_v52 = vand.u32 4294901760, %v1085_v46  ;;  %v7222_v53 = vpack.c.bf16 %v8299_v16, %v8297_v15  ;;  %v1585_v29 = vld [vmem:[#allocation14 + $0x18] sm:$0xff] }
  0xfe   : > { %v669_v36 = vand.u32 4294901760, %v668_v32  ;;  %6744 = vmatmul.mubr.f32.vlgmr.msra.gmra.mrb[0].mxu0 %v667_v27  ;;  %v7216_v41 = vpack.c.bf16 %v701_v35, %v694_v34  ;;  %v1166_v54 = vsub.f32 %v1094_v44, %v8336_v48  ;;  %v1178_v57 = vand.u32 4294901760, %v8338_v49  ;;  %s8689_s30 = scalar_lea.hbm %s8809_s29, %s6483_s18 }
  0xff   : > { %7232 = vmatpush3.bf16.msra.mxu0 %v7231_v31  ;;  %6754 = vmatprep.mubr.msk.f32.mxu0 %vm7890_vm0, %v7891_v1  ;;  %v1191_v55 = vsub.f32 %v1084_v45, %v1103_v51  ;;  %v1198_v56 = vsub.f32 %v1085_v46, %v1106_v52  ;;  %v1185_v58 = vand.u32 4294901760, %v8340_v50  ;;  %v7243_v59 = vpack.c.bf16 %v1100_v43, %v1097_v42 }
 0x100   : > { %6711 = vmatmul.mubr.f32.vlgmr.msra.gmra.mrb[0].mxu1 %v669_v36  ;;  %7233 = vmatprep.subr.bf16.mxu0 %v7889_v0  ;;  %v1167_v60 = vand.u32 4294901760, %v1166_v54  ;;  %v1179_v61 = vsub.f32 %v8338_v49, %v1178_v57  ;;  %v7246_v3 = vpack.c.bf16 %v1106_v52, %v1103_v51  ;;  %v7255_v14 = vpack.c.bf16 %v8340_v50, %v8338_v49 }
 0x101   : > { %7214 = vmatpush3.bf16.msra.mxu1 %v7213_v33  ;;  %6721 = vmatprep.mubr.msk.f32.mxu1 %vm7890_vm0, %v7891_v1  ;;  %v1186_v62 = vsub.f32 %v8340_v50, %v1185_v58  ;;  %v1192_v63 = vand.u32 4294901760, %v1191_v55  ;;  %v1199_v2 = vand.u32 4294901760, %v1198_v56  ;;  %v7258_v15 = vpack.c.bf16 %v1198_v56, %v1191_v55 }
 0x102   : > { %7215 = vmatprep.subr.bf16.mxu1 %v7889_v0  ;;  %v1168_v4 = vsub.f32 %v1166_v54, %v1167_v60  ;;  %v1180_v5 = vand.u32 4294901760, %v1179_v61  ;;  %v7267_v16 = vpack.c.bf16 %v1185_v58, %v1178_v57  ;;  %v1594_v23 = vsel %vm592_vm1, %v1581_v20, 0  ;;  %v6478_v57 = vld [vmem:[%s8739_s5] ss:$0 sm:$0xff] }
 0x103   : > { %7235 = vmatpush3.bf16.msra.mxu0 %v7234_v40  ;;  %v1187_v6 = vand.u32 4294901760, %v1186_v62  ;;  %v1193_v7 = vsub.f32 %v1191_v55, %v1192_v63  ;;  %v1200_v8 = vsub.f32 %v1198_v56, %v1199_v2  ;;  %v8399_v24 = vand.u32 4294901760, %v1594_v23 }
 0x104   : > { %7236 = vmatprep.subr.bf16.mxu0 %v7889_v0  ;;  %v1169_v9 = vand.u32 4294901760, %v1168_v4  ;;  %v1603_v31 = vand.u32 4294901760, %v1584_v28  ;;  %v1606_v32 = vand.u32 4294901760, %v1585_v29  ;;  %vm2084_vm2 = vcmask 64512  }
 0x105   : > { %7217 = vmatpush3.bf16.msra.mxu1 %v7216_v41  ;;  %v7249_v10 = vpack.c.bf16 %v1187_v6, %v1180_v5  ;;  %v1194_v11 = vand.u32 4294901760, %v1193_v7  ;;  %v1666_v30 = vsub.f32 %v1594_v23, %v8399_v24  ;;  %v6479_v5 = vld [vmem:[%s8741_s7] ss:$0 sm:$0xff]  ;;  %vm3924_vm4 = vcmask 130112  }
 0x106   : > { %7218 = vmatprep.subr.bf16.mxu1 %v7889_v0  ;;  %6755 = vmatmul.mubr.f32.vlgmr.msra.gmra.mrb[0].mxu0 %v8301_v17  ;;  %v7282_v36 = vpack.c.bf16 %v1606_v32, %v1603_v31  ;;  %v1691_v37 = vsub.f32 %v1584_v28, %v1603_v31  ;;  %v1698_v38 = vsub.f32 %v1585_v29, %v1606_v32  ;;  %vm4849_vm5 = vcmask 195712  }
 0x107   : > { %7238 = vmatpush3.bf16.msra.mxu0 %v7207_v12  ;;  %6765 = vmatprep.mubr.msk.f32.mxu0 %vm7890_vm0, %v7891_v1  ;;  %v1201_v12 = vand.u32 4294901760, %v1200_v8  ;;  %v1667_v35 = vand.u32 4294901760, %v1666_v30  ;;  %vm5774_vm6 = vcmask 261312  }
 0x108   : > { %6722 = vmatmul.mubr.f32.vlgmr.msra.gmra.mrb[0].mxu1 %v8301_v17  ;;  %7239 = vmatprep.subr.bf16.mxu0 %v7889_v0  ;;  %v1692_v43 = vand.u32 4294901760, %v1691_v37  ;;  %v1699_v44 = vand.u32 4294901760, %v1698_v38 }
 0x109   : > { %7220 = vmatpush3.bf16.msra.mxu1 %v7219_v47  ;;  %6732 = vmatprep.mubr.msk.f32.mxu1 %vm7890_vm0, %v7891_v1  ;;  %v7252_v13 = vpack.c.bf16 %v1201_v12, %v1194_v11  ;;  %v1668_v40 = vsub.f32 %v1666_v30, %v1667_v35 }
 0x10a   : > { %7221 = vmatprep.subr.bf16.mxu1 %v7889_v0  ;;  %v1693_v47 = vsub.f32 %v1691_v37, %v1692_v43  ;;  %v7306_v56 = vpack.c.bf16 %v1699_v44, %v1692_v43 }
 0x10b   : > { %7241 = vmatpush3.bf16.msra.mxu0 %v8303_v18  ;;  %v1582_v18 = vld [vmem:[#allocation14] sm:$0xff]  ;;  %v1669_v45 = vand.u32 4294901760, %v1668_v40 }
 0x10c   : > { %7278 = vmatprep.subr.bf16.mxu0 %v7889_v0  ;;  %v1597_v21 = vand.u32 4294901760, %v1582_v18  ;;  %v1694_v50 = vand.u32 4294901760, %v1693_v47 }
 0x10d   : > { %7223 = vmatpush3.bf16.msra.mxu1 %v7222_v53 }
 0x10e   : > { %7242 = vmatprep.subr.bf16.mxu1 %v7889_v0  ;;  %6766 = vmatmul.mubr.f32.vlgmr.msra.gmra.mrb[0].mxu0 %v8301_v17  ;;  %v7270_v17 = vpack.c.bf16 %v1199_v2, %v1192_v63  ;;  %v1677_v26 = vsub.f32 %v1582_v18, %v1597_v21 }
 0x10f   : > { %6842 = vmatprep.mubr.msk.f32.mxu0 %vm7890_vm0, %v7891_v1 }
 0x110   : > { %6733 = vmatmul.mubr.f32.vlgmr.msra.gmra.mrb[0].mxu1 %v8311_v22  ;;  %v1600_v22 = vand.u32 4294901760, %v1583_v19  ;;  %v1678_v33 = vand.u32 4294901760, %v1677_v26 }
 0x111   : > { %7244 = vmatpush3.bf16.msra.mxu1 %v7243_v59  ;;  %6776 = vmatprep.mubr.msk.f32.mxu1 %vm7890_vm0, %v7891_v1 }
 0x112   : > { %7245 = vmatprep.subr.bf16.mxu1 %v7889_v0  ;;  %v7279_v25 = vpack.c.bf16 %v1600_v22, %v1597_v21  ;;  %v1684_v27 = vsub.f32 %v1583_v19, %v1600_v22  ;;  %v1679_v39 = vsub.f32 %v1677_v26, %v1678_v33 }
 0x114   : > { %7280 = vmatpush3.bf16.msra.mxu0 %v7279_v25  ;;  %v1685_v34 = vand.u32 4294901760, %v1684_v27  ;;  %v1680_v42 = vand.u32 4294901760, %v1679_v39  ;;  %v7291_v53 = vpack.c.bf16 %v1684_v27, %v1677_v26 }
 0x115   : > { %7247 = vmatpush3.bf16.msra.mxu1 %v7246_v3  ;;  %7281 = vmatprep.subr.bf16.mxu0 %v7889_v0 }
 0x116   : > { %7248 = vmatprep.subr.bf16.mxu1 %v7889_v0  ;;  %v1686_v41 = vsub.f32 %v1684_v27, %v1685_v34  ;;  %v7303_v55 = vpack.c.bf16 %v1685_v34, %v1678_v33 }
 0x118   : > { %6777 = vmatmul.mubr.f32.vlgmr.msra.gmra.mrb[2].mxu1 %v1169_v9  ;;  %7283 = vmatpush3.bf16.msra.mxu0 %v7282_v36  ;;  %v1687_v46 = vand.u32 4294901760, %v1686_v41  ;;  %v6480_v41 = vld [vmem:[%s8743_s9] ss:$0 sm:$0xff] }
 0x119   : > { %7250 = vmatpush3.bf16.msra.mxu1 %v7249_v10  ;;  %6787 = vmatprep.mubr.msk.f32.mxu1 %vm7890_vm0, %v7891_v1 }
 0x11a   : > { %7251 = vmatprep.subr.bf16.mxu1 %v7889_v0  ;;  %7284 = vmatprep.subr.bf16.mxu0 %v7889_v0  ;;  %v7285_v49 = vpack.c.bf16 %v1687_v46, %v1680_v42 }
 0x11b   : > { %6843 = vmatmul.mubr.f32.vlgmr.msra.gmra.mrb[2].mxu0 %v1669_v45 }
 0x11c   : > { %6853 = vmatprep.mubr.msk.f32.mxu0 %vm7890_vm0, %v7891_v1  ;;  %7286 = vmatpush3.bf16.msra.mxu0 %v7285_v49 }
 0x11d   : > { %7253 = vmatpush3.bf16.msra.mxu1 %v7252_v13  ;;  %7287 = vmatprep.subr.bf16.mxu0 %v7889_v0 }
 0x11e   : > { %7254 = vmatprep.subr.bf16.mxu1 %v7889_v0 }
 0x120   : > { %6788 = vmatmul.mubr.f32.vlgmr.msra.gmra.mrb[2].mxu1 %v8336_v48 }
 0x121   : > { %7256 = vmatpush3.bf16.msra.mxu1 %v7255_v14  ;;  %6798 = vmatprep.mubr.msk.f32.mxu1 %vm7890_vm0, %v7891_v1 }
 0x122   : > { %7257 = vmatprep.subr.bf16.mxu1 %v7889_v0 }
 0x125   : > { %7259 = vmatpush3.bf16.msra.mxu1 %v7258_v15 }
 0x126   : > { %7260 = vmatprep.subr.bf16.mxu1 %v7889_v0 }
 0x128   : > { %6799 = vmatmul.mubr.f32.vlgmr.msra.gmra.mrb[2].mxu1 %v1166_v54  ;;  %v7294_v54 = vpack.c.bf16 %v1698_v38, %v1691_v37 }
 0x129   : > { %7262 = vmatpush3.bf16.msra.mxu1 %v7243_v59  ;;  %6809 = vmatprep.mubr.msk.f32.mxu1 %vm7890_vm0, %v7891_v1 }
 0x12a   : > { %7263 = vmatprep.subr.bf16.mxu1 %v7889_v0 }
 0x12d   : > { %7265 = vmatpush3.bf16.msra.mxu1 %v7246_v3 }
 0x12e   : > { %7266 = vmatprep.subr.bf16.mxu1 %v7889_v0 }
 0x130   : > { %6810 = vmatmul.mubr.f32.vlgmr.msra.gmra.mrb[2].mxu1 %v1167_v60 }
 0x131   : > { %7268 = vmatpush3.bf16.msra.mxu1 %v7267_v16  ;;  %6820 = vmatprep.mubr.msk.f32.mxu1 %vm7890_vm0, %v7891_v1 }
 0x132   : > { %7269 = vmatprep.subr.bf16.mxu1 %v7889_v0 }
 0x135   : > { %7271 = vmatpush3.bf16.msra.mxu1 %v7270_v17 }
 0x136   : > { %7272 = vmatprep.subr.bf16.mxu1 %v7889_v0 }
 0x138   : > { %6821 = vmatmul.mubr.f32.vlgmr.msra.gmra.mrb[2].mxu1 %v8336_v48 }
 0x139   : > { %7274 = vmatpush3.bf16.msra.mxu1 %v7243_v59  ;;  %6831 = vmatprep.mubr.msk.f32.mxu1 %vm7890_vm0, %v7891_v1 }
 0x13a   : > { %7275 = vmatprep.subr.bf16.mxu1 %v7889_v0 }
 0x13d   : > { %7277 = vmatpush3.bf16.msra.mxu1 %v7246_v3 }
 0x13e   : > { %6900 = vmatprep.subr.mxu1 %v7891_v1 }
 0x140   : > { %6832 = vmatmul.mubr.f32.vlgmr.msra.gmra.mrb[2].mxu1 %v8336_v48  ;;  %v1700_v48 = vsub.f32 %v1698_v38, %v1699_v44 }
 0x141   : > { %6902 = vmatprep.mubr.msk.f32.mxu1 %vm7890_vm0, %v7891_v1 }
 0x142   : > { %v1701_v51 = vand.u32 4294901760, %v1700_v48 }
 0x144   : > { %v7288_v52 = vpack.c.bf16 %v1701_v51, %v1694_v50 }
 0x146   : > { %7289 = vmatpush3.bf16.msra.mxu0 %v7288_v52 }
 0x147   : > { %7290 = vmatprep.subr.bf16.mxu0 %v7889_v0 }
 0x149   : > { %6854 = vmatmul.mubr.f32.vlgmr.msra.gmra.mrb[2].mxu0 %v8399_v24 }
 0x14a   : > { %7292 = vmatpush3.bf16.msra.mxu0 %v7291_v53  ;;  %6864 = vmatprep.mubr.msk.f32.mxu0 %vm7890_vm0, %v7891_v1 }
 0x14b   : > { %7293 = vmatprep.subr.bf16.mxu0 %v7889_v0 }
 0x14e   : > { %7295 = vmatpush3.bf16.msra.mxu0 %v7294_v54 }
 0x14f   : > { %7296 = vmatprep.subr.bf16.mxu0 %v7889_v0 }
 0x151   : > { %6865 = vmatmul.mubr.f32.vlgmr.msra.gmra.mrb[2].mxu0 %v1666_v30 }
 0x152   : > { %7298 = vmatpush3.bf16.msra.mxu0 %v7279_v25  ;;  %6875 = vmatprep.mubr.msk.f32.mxu0 %vm7890_vm0, %v7891_v1 }
 0x153   : > { %7299 = vmatprep.subr.bf16.mxu0 %v7889_v0 }
 0x156   : > { %7301 = vmatpush3.bf16.msra.mxu0 %v7282_v36 }
 0x157   : > { %7302 = vmatprep.subr.bf16.mxu0 %v7889_v0 }
 0x159   : > { %6876 = vmatmul.mubr.f32.vlgmr.msra.gmra.mrb[2].mxu0 %v1667_v35 }
 0x15a   : > { %7304 = vmatpush3.bf16.msra.mxu0 %v7303_v55  ;;  %6886 = vmatprep.mubr.msk.f32.mxu0 %vm7890_vm0, %v7891_v1 }
 0x15b   : > { %7305 = vmatprep.subr.bf16.mxu0 %v7889_v0 }
 0x15e   : > { %7307 = vmatpush3.bf16.msra.mxu0 %v7306_v56 }
 0x15f   : > { %7308 = vmatprep.subr.bf16.mxu0 %v7889_v0 }
 0x161   : > { %6887 = vmatmul.mubr.f32.vlgmr.msra.gmra.mrb[2].mxu0 %v8399_v24 }
 0x162   : > { %7310 = vmatpush3.bf16.msra.mxu0 %v7279_v25  ;;  %6897 = vmatprep.mubr.msk.f32.mxu0 %vm7890_vm0, %v7891_v1 }
 0x163   : > { %7311 = vmatprep.subr.bf16.mxu0 %v7889_v0 }
 0x166   : > { %7313 = vmatpush3.bf16.msra.mxu0 %v7282_v36 }
 0x167   : > { %6960 = vmatprep.subr.mxu0 %v7891_v1 }
 0x169   : > { %6898 = vmatmul.mubr.f32.vlgmr.msra.gmra.mrb[2].mxu0 %v8399_v24 }
 0x16a   : > { %6962 = vmatprep.mubr.msk.f32.mxu0 %vm7890_vm0, %v7891_v1 }
 0x1e1   : > { %v1077_v58 = vpop.f32.mrb[0].mxu0 }
 0x1e2   : > { %v6767_v59 = vpop.f32.mrb[1].mxu0 }
 0x1e3   : > { %v842_v60 = vpop.f32.mrb[0].mxu1 }
 0x1e4   : > { %v7350_v61 = vadd.f32 %v6478_v57, %v842_v60  ;;  %v6734_v62 = vpop.f32.mrb[1].mxu1 }
 0x1e6   : > { %v7351_v63 = vadd.f32 %v7350_v61, %v1077_v58 }
 0x1e8   : > { %3926 = vrot.lane.b32.xlu1 %v7351_v63, %s7892_s1  ;;  %3000 = vrot.lane.b32.xlu0 %v7351_v63, %s7893_s21  ;;  %v2086_v2 = vsel %vm2084_vm2, %v7351_v63, 0 }
 0x1e9   : > { %v2157_v3 = vand.u32 4294901760, %v2086_v2 }
 0x1eb   : > { %v2158_v4 = vsub.f32 %v2086_v2, %v2157_v3 }
 0x1ed   : > { %v2159_v6 = vand.u32 4294901760, %v2158_v4 }
 0x1ef   : > { %v2160_v11 = vsub.f32 %v2158_v4, %v2159_v6 }
 0x1f1   : > { %v2161_v14 = vand.u32 4294901760, %v2160_v11 }
 0x213   : > { %v1577_v7 = vpop.f32.mrb[2].mxu1 }
 0x214   : > { %v7352_v8 = vadd.f32 %v6479_v5, %v1577_v7  ;;  %v6833_v9 = vpop.f32.mrb[3].mxu1 }
 0x216   : > { %3928 = vrot.lane.b32.xlu1 %v7352_v8, %s7892_s1  ;;  %3002 = vrot.lane.b32.xlu0 %v7352_v8, %s7893_s21  ;;  %v2089_v10 = vsel %vm2084_vm2, %v7352_v8, 0 }
 0x217   : > { %v2092_v12 = vand.u32 4294901760, %v2089_v10 }
 0x219   : > { %6901 = vmatpush3.xpose.msra.mxu1 %v2092_v12  ;;  %v2169_v13 = vsub.f32 %v2089_v10, %v2092_v12 }
 0x21a   : > { %4853 = vrot.lane.b32.xlu1 %v7352_v8, %s7894_s16  ;;  %4851 = vrot.lane.b32.xlu0 %v7351_v63, %s7894_s16 }
 0x21b   : > { %6905 = vmatprep.subr.mxu1 %v7891_v1  ;;  %v2170_v15 = vand.u32 4294901760, %v2169_v13 }
 0x21c   : > { %6903 = vmatmul.mubr.f32.vlgmr.msra.gmra.mrb[4].mxu1 %v2161_v14 }
 0x21d   : > { %v2171_v16 = vsub.f32 %v2169_v13, %v2170_v15  ;;  %6907 = vmatprep.mubr.msk.f32.mxu1 %vm7890_vm0, %v7891_v1 }
 0x21f   : > { %v2172_v17 = vand.u32 4294901760, %v2171_v16 }
 0x221   : > { %6906 = vmatpush3.xpose.msra.mxu1 %v2172_v17 }
 0x222   : > { %6910 = vmatprep.subr.mxu1 %v7891_v1 }
 0x224   : > { %6908 = vmatmul.mubr.f32.vlgmr.msra.gmra.mrb[4].mxu1 %v2157_v3 }
 0x225   : > { %6911 = vmatpush3.xpose.msra.mxu1 %v2169_v13  ;;  %6912 = vmatprep.mubr.msk.f32.mxu1 %vm7890_vm0, %v7891_v1 }
 0x226   : > { %6915 = vmatprep.subr.mxu1 %v7891_v1 }
 0x22c   : > { %6913 = vmatmul.mubr.f32.vlgmr.msra.gmra.mrb[4].mxu1 %v2158_v4 }
 0x22d   : > { %6916 = vmatpush3.xpose.msra.mxu1 %v2092_v12  ;;  %6917 = vmatprep.mubr.msk.f32.mxu1 %vm7890_vm0, %v7891_v1 }
 0x22e   : > { %6920 = vmatprep.subr.mxu1 %v7891_v1 }
 0x234   : > { %6918 = vmatmul.mubr.f32.vlgmr.msra.gmra.mrb[4].mxu1 %v2159_v6 }
 0x235   : > { %6921 = vmatpush3.xpose.msra.mxu1 %v2170_v15  ;;  %6922 = vmatprep.mubr.msk.f32.mxu1 %vm7890_vm0, %v7891_v1 }
 0x236   : > { %6925 = vmatprep.subr.mxu1 %v7891_v1 }
 0x23c   : > { %6923 = vmatmul.mubr.f32.vlgmr.msra.gmra.mrb[4].mxu1 %v2157_v3  ;;  %v2077_v43 = vpop.f32.mrb[2].mxu0 }
 0x23d   : > { %6926 = vmatpush3.xpose.msra.mxu1 %v2092_v12  ;;  %6927 = vmatprep.mubr.msk.f32.mxu1 %vm7890_vm0, %v7891_v1  ;;  %v8484_v44 = vadd.f32 %v6480_v41, %v2077_v43  ;;  %v6899_v45 = vpop.f32.mrb[3].mxu0 }
 0x23e   : > { %6930 = vmatprep.subr.mxu1 %v7891_v1 }
 0x23f   : > { %v8487_v48 = vand.u32 4294901760, %v8484_v44 }
 0x241   : > { %v2631_v41 = vsub.f32 %v8484_v44, %v8487_v48 }
 0x243   : > { %v2632_v45 = vand.u32 4294901760, %v2631_v41 }
 0x244   : > { %6928 = vmatmul.mubr.f32.vlgmr.msra.gmra.mrb[4].mxu1 %v2157_v3  ;;  %v2081_v3 = vld [vmem:[%s512_s14] sm:$0xff]  ;;  %s7802_s14 = scalar_lea.vmem %s7801_s4, 256 }
 0x245   : > { %6932 = vmatprep.mubr.msk.f32.mxu1 %vm7890_vm0, %v7891_v1  ;;  %6931 = vmatpush3.msra.mxu1 %v8487_v48  ;;  %vm2082_vm3 = vcmp.eq.s32.totalorder %v2081_v3, 0 }
 0x246   : > { %6935 = vmatprep.subr.mxu1 %v7891_v1  ;;  %v2083_v5 = vsel %vm2082_vm3, -1e+09, %v7891_v1 }
 0x25a   : > { %v3001_v18 = vpop.permute.xlu0 %3000  ;;  %v3927_v32 = vpop.permute.xlu1 %3926 }
 0x25b   : > { %v3004_v19 = vsel %vm2084_vm2, %v3001_v18, 0  ;;  %v3930_v34 = vsel %vm2084_vm2, %v3927_v32, 0 }
 0x25c   : > { %v3074_v20 = vand.u32 4294901760, %v3004_v19  ;;  %v4000_v36 = vand.u32 4294901760, %v3930_v34 }
 0x25e   : > { %v3075_v21 = vsub.f32 %v3004_v19, %v3074_v20  ;;  %v4001_v38 = vsub.f32 %v3930_v34, %v4000_v36 }
 0x260   : > { %v3076_v22 = vand.u32 4294901760, %v3075_v21  ;;  %v4002_v40 = vand.u32 4294901760, %v4001_v38 }
 0x262   : > { %v3077_v24 = vsub.f32 %v3075_v21, %v3076_v22  ;;  %v4003_v46 = vsub.f32 %v4001_v38, %v4002_v40 }
 0x264   : > { %v3078_v28 = vand.u32 4294901760, %v3077_v24  ;;  %v4004_v49 = vand.u32 4294901760, %v4003_v46 }
 0x288   : > { %v3003_v23 = vpop.permute.xlu0 %3002  ;;  %v3929_v33 = vpop.permute.xlu1 %3928 }
 0x289   : > { %v3006_v25 = vsel %vm2084_vm2, %v3003_v23, 0  ;;  %v3932_v35 = vsel %vm2084_vm2, %v3929_v33, 0 }
 0x28a   : > { %v3009_v26 = vand.u32 4294901760, %v3006_v25  ;;  %v3935_v37 = vand.u32 4294901760, %v3932_v35 }
 0x28c   : > { %v3086_v27 = vsub.f32 %v3006_v25, %v3009_v26  ;;  %6961 = vmatpush3.xpose.msra.mxu0 %v3009_v26  ;;  %v4012_v39 = vsub.f32 %v3932_v35, %v3935_v37  ;;  %v4852_v51 = vpop.permute.xlu0 %4851  ;;  %v4854_v52 = vpop.permute.xlu1 %4853 }
 0x28d   : > { %6965 = vmatprep.subr.mxu0 %v7891_v1  ;;  %v4855_v53 = vsel %vm2084_vm2, %v4852_v51, 0  ;;  %v4857_v54 = vsel %vm2084_vm2, %v4854_v52, 0  ;;  %v2633_v51 = vsub.f32 %v2631_v41, %v2632_v45 }
 0x28e   : > { %v3087_v29 = vand.u32 4294901760, %v3086_v27  ;;  %v4013_v42 = vand.u32 4294901760, %v4012_v39  ;;  %v4925_v55 = vand.u32 4294901760, %v4855_v53  ;;  %v4860_v56 = vand.u32 4294901760, %v4857_v54 }
 0x28f   : > { %6963 = vmatmul.mubr.f32.vlgmr.msra.gmra.mrb[4].mxu0 %v3078_v28 }
 0x290   : > { %v3088_v30 = vsub.f32 %v3086_v27, %v3087_v29  ;;  %6967 = vmatprep.mubr.msk.f32.mxu0 %vm7890_vm0, %v7891_v1  ;;  %v4014_v47 = vsub.f32 %v4012_v39, %v4013_v42  ;;  %v4926_v57 = vsub.f32 %v4855_v53, %v4925_v55  ;;  %v4937_v58 = vsub.f32 %v4857_v54, %v4860_v56 }
 0x291   : > { %v2634_v54 = vand.u32 4294901760, %v2633_v51  ;;  %v5779_v51 = vld [vmem:[%s8806_s13 + $0x10] sm:$0xff] }
 0x292   : > { %v3089_v31 = vand.u32 4294901760, %v3088_v30  ;;  %v4015_v50 = vand.u32 4294901760, %v4014_v47  ;;  %v4927_v59 = vand.u32 4294901760, %v4926_v57  ;;  %v4938_v60 = vand.u32 4294901760, %v4937_v58 }
 0x294   : > { %6966 = vmatpush3.xpose.msra.mxu0 %v3089_v31  ;;  %v4928_v61 = vsub.f32 %v4926_v57, %v4927_v59  ;;  %v4939_v62 = vsub.f32 %v4937_v58, %v4938_v60 }
 0x295   : > { %6970 = vmatprep.subr.mxu0 %v7891_v1 }
 0x296   : > { %v4929_v63 = vand.u32 4294901760, %v4928_v61  ;;  %v4940_v2 = vand.u32 4294901760, %v4939_v62 }
 0x297   : > { %6968 = vmatmul.mubr.f32.vlgmr.msra.gmra.mrb[4].mxu0 %v3074_v20 }
 0x298   : > { %6971 = vmatpush3.xpose.msra.mxu0 %v3086_v27  ;;  %6972 = vmatprep.mubr.msk.f32.mxu0 %vm7890_vm0, %v7891_v1 }
 0x299   : > { %6975 = vmatprep.subr.mxu0 %v7891_v1 }
 0x29f   : > { %6973 = vmatmul.mubr.f32.vlgmr.msra.gmra.mrb[4].mxu0 %v3075_v21 }
 0x2a0   : > { %6976 = vmatpush3.xpose.msra.mxu0 %v3009_v26  ;;  %6977 = vmatprep.mubr.msk.f32.mxu0 %vm7890_vm0, %v7891_v1 }
 0x2a1   : > { %6980 = vmatprep.subr.mxu0 %v7891_v1 }
 0x2a7   : > { %6978 = vmatmul.mubr.f32.vlgmr.msra.gmra.mrb[4].mxu0 %v3076_v22 }
 0x2a8   : > { %6981 = vmatpush3.xpose.msra.mxu0 %v3087_v29  ;;  %6982 = vmatprep.mubr.msk.f32.mxu0 %vm7890_vm0, %v7891_v1 }
 0x2a9   : > { %6985 = vmatprep.subr.mxu0 %v7891_v1 }
 0x2af   : > { %6983 = vmatmul.mubr.f32.vlgmr.msra.gmra.mrb[4].mxu0 %v3074_v20 }
 0x2b0   : > { %6986 = vmatpush3.xpose.msra.mxu0 %v3009_v26  ;;  %6987 = vmatprep.mubr.msk.f32.mxu0 %vm7890_vm0, %v7891_v1 }
 0x2b1   : > { %7020 = vmatprep.subr.mxu0 %v7891_v1 }
 0x2b7   : > { %6988 = vmatmul.mubr.f32.vlgmr.msra.gmra.mrb[4].mxu0 %v3074_v20 }
 0x2b8   : > { %7021 = vmatpush3.xpose.msra.mxu0 %v3935_v37  ;;  %7022 = vmatprep.mubr.msk.f32.mxu0 %vm7890_vm0, %v7891_v1 }
 0x2b9   : > { %7025 = vmatprep.subr.mxu0 %v7891_v1 }
 0x2bb   : > { %7023 = vmatmul.mubr.f32.vlgmr.msra.gmra.mrb[6].mxu0 %v4004_v49 }
 0x2bc   : > { %7026 = vmatpush3.xpose.msra.mxu0 %v4015_v50  ;;  %7027 = vmatprep.mubr.msk.f32.mxu0 %vm7890_vm0, %v7891_v1 }
 0x2bd   : > { %7030 = vmatprep.subr.mxu0 %v7891_v1 }
 0x2c3   : > { %7028 = vmatmul.mubr.f32.vlgmr.msra.gmra.mrb[6].mxu0 %v4000_v36 }
 0x2c4   : > { %7031 = vmatpush3.xpose.msra.mxu0 %v4012_v39  ;;  %7032 = vmatprep.mubr.msk.f32.mxu0 %vm7890_vm0, %v7891_v1 }
 0x2c5   : > { %7035 = vmatprep.subr.mxu0 %v7891_v1 }
 0x2cb   : > { %7033 = vmatmul.mubr.f32.vlgmr.msra.gmra.mrb[6].mxu0 %v4001_v38 }
 0x2cc   : > { %7036 = vmatpush3.xpose.msra.mxu0 %v3935_v37  ;;  %7037 = vmatprep.mubr.msk.f32.mxu0 %vm7890_vm0, %v7891_v1 }
 0x2cd   : > { %7040 = vmatprep.subr.mxu0 %v7891_v1 }
 0x2d3   : > { %7038 = vmatmul.mubr.f32.vlgmr.msra.gmra.mrb[6].mxu0 %v4002_v40 }
 0x2d4   : > { %7041 = vmatpush3.xpose.msra.mxu0 %v4013_v42  ;;  %7042 = vmatprep.mubr.msk.f32.mxu0 %vm7890_vm0, %v7891_v1 }
 0x2d5   : > { %7045 = vmatprep.subr.mxu0 %v7891_v1 }
 0x2db   : > { %7043 = vmatmul.mubr.f32.vlgmr.msra.gmra.mrb[6].mxu0 %v4000_v36 }
 0x2dc   : > { %7046 = vmatpush3.xpose.msra.mxu0 %v3935_v37  ;;  %7047 = vmatprep.mubr.msk.f32.mxu0 %vm7890_vm0, %v7891_v1 }
 0x2dd   : > { %7080 = vmatprep.subr.mxu0 %v7891_v1 }
 0x2e3   : > { %7048 = vmatmul.mubr.f32.vlgmr.msra.gmra.mrb[6].mxu0 %v4000_v36 }
 0x2e4   : > { %7081 = vmatpush3.xpose.msra.mxu0 %v4860_v56  ;;  %7082 = vmatprep.mubr.msk.f32.mxu0 %vm7890_vm0, %v7891_v1 }
 0x2e5   : > { %7085 = vmatprep.subr.mxu0 %v7891_v1 }
 0x2e7   : > { %7083 = vmatmul.mubr.f32.vlgmr.msra.gmra.mrb[8].mxu0 %v4929_v63 }
 0x2e8   : > { %7086 = vmatpush3.xpose.msra.mxu0 %v4940_v2  ;;  %7087 = vmatprep.mubr.msk.f32.mxu0 %vm7890_vm0, %v7891_v1 }
 0x2e9   : > { %7090 = vmatprep.subr.mxu0 %v7891_v1 }
 0x2ef   : > { %7088 = vmatmul.mubr.f32.vlgmr.msra.gmra.mrb[8].mxu0 %v4925_v55 }
 0x2f0   : > { %7091 = vmatpush3.xpose.msra.mxu0 %v4937_v58  ;;  %7092 = vmatprep.mubr.msk.f32.mxu0 %vm7890_vm0, %v7891_v1 }
 0x2f1   : > { %7095 = vmatprep.subr.mxu0 %v7891_v1 }
 0x2f7   : > { %7093 = vmatmul.mubr.f32.vlgmr.msra.gmra.mrb[8].mxu0 %v4926_v57 }
 0x2f8   : > { %7096 = vmatpush3.xpose.msra.mxu0 %v4860_v56  ;;  %7097 = vmatprep.mubr.msk.f32.mxu0 %vm7890_vm0, %v7891_v1 }
 0x2f9   : > { %7100 = vmatprep.subr.mxu0 %v7891_v1 }
 0x2ff   : > { %7098 = vmatmul.mubr.f32.vlgmr.msra.gmra.mrb[8].mxu0 %v4927_v59 }
 0x300   : > { %7101 = vmatpush3.xpose.msra.mxu0 %v4938_v60  ;;  %7102 = vmatprep.mubr.msk.f32.mxu0 %vm7890_vm0, %v7891_v1 }
 0x301   : > { %7105 = vmatprep.subr.mxu0 %v7891_v1 }
 0x307   : > { %7103 = vmatmul.mubr.f32.vlgmr.msra.gmra.mrb[8].mxu0 %v4925_v55 }
 0x308   : > { %7106 = vmatpush3.xpose.msra.mxu0 %v4860_v56  ;;  %7107 = vmatprep.mubr.msk.f32.mxu0 %vm7890_vm0, %v7891_v1 }
 0x309   : > { %7314 = vmatprep.subr.bf16.mxu0 %v7889_v0 }
 0x30f   : > { %7108 = vmatmul.mubr.f32.vlgmr.msra.gmra.mrb[8].mxu0 %v4925_v55 }
 0x310   : > { %7148 = vmatprep.mubr.msk.f32.mxu0 %vm7890_vm0, %v7891_v1 }
 0x317   : > { %v2533_v4 = vpop.f32.mrb[4].mxu1 }
 0x318   : > { %v2537_v6 = vmul.f32 0.35355338, %v2533_v4  ;;  %v6929_v7 = vpop.f32.mrb[5].mxu1 }
 0x31a   : > { %v2538_v8 = vadd.f32 %v2537_v6, %v2083_v5 }
 0x31c   : > { %v2539_v9 = vsel %vm2084_vm2, %v2538_v8, -inf }
 0x31d   : > { %2540 = vmax.xlane.f32.xlu0 %v2539_v9 }
 0x38a   : > { %v3450_v10 = vpop.f32.mrb[4].mxu0 }
 0x38b   : > { %v3454_v11 = vmul.f32 0.35355338, %v3450_v10  ;;  %v6989_v12 = vpop.f32.mrb[5].mxu0 }
 0x38d   : > { %v3455_v13 = vadd.f32 %v3454_v11, %v2083_v5 }
 0x38f   : > { %v3456_v14 = vsel %vm2084_vm2, %v3455_v13, -inf }
 0x390   : > { %3457 = vmax.xlane.f32.xlu1 %v3456_v14 }
 0x3aa   : > { %v2541_v15 = vpop.xlane.xlu0 %2540 }
 0x3ab   : > { %v2542_v16 = vsub.f32 %v2538_v8, %v2541_v15 }
 0x3ad   : > { %v2543_v17 = vmul.f32 1.442695, %v2542_v16 }
 0x3af   : > { %7576 = vpow2.f32 %v2543_v17 }
 0x3b6   : > { %v4376_v18 = vpop.f32.mrb[6].mxu0 }
 0x3b7   : > { %v4380_v19 = vmul.f32 0.35355338, %v4376_v18  ;;  %v7049_v20 = vpop.f32.mrb[7].mxu0 }
 0x3b9   : > { %v7577_v21 = vpop.eup %7576  ;;  %v4381_v23 = vadd.f32 %v4380_v19, %v2083_v5 }
 0x3ba   : > { %v2545_v22 = vsel %vm2084_vm2, %v7577_v21, 0.0 }
 0x3bb   : > { %2546 = vadd.xlane.f32.xlu0 %v2545_v22  ;;  %v4382_v24 = vsel %vm2084_vm2, %v4381_v23, -inf }
 0x3bf   : > { %4383 = vmax.xlane.f32.xlu0 %v4382_v24 }
 0x3e2   : > { %v5301_v25 = vpop.f32.mrb[8].mxu0 }
 0x3e3   : > { %v5305_v26 = vmul.f32 0.35355338, %v5301_v25  ;;  %v7109_v27 = vpop.f32.mrb[9].mxu0 }
 0x3e5   : > { %v5306_v28 = vadd.f32 %v5305_v26, %v2083_v5 }
 0x3e7   : > { %v5307_v29 = vsel %vm2084_vm2, %v5306_v28, -inf }
 0x3e8   : > { %5308 = vmax.xlane.f32.xlu0 %v5307_v29 }
 0x41d   : > { %v3458_v30 = vpop.xlane.xlu1 %3457 }
 0x41e   : > { %v3459_v31 = vsub.f32 %v3455_v13, %v3458_v30 }
 0x420   : > { %v3460_v32 = vmul.f32 1.442695, %v3459_v31 }
 0x422   : > { %7578 = vpow2.f32 %v3460_v32 }
 0x42c   : > { %v8539_v33 = vpop.eup %7578 }
 0x42d   : > { %v3462_v34 = vsel %vm2084_vm2, %v8539_v33, 0.0 }
 0x42e   : > { %3463 = vadd.xlane.f32.xlu1 %v3462_v34 }
 0x43f   : > { %3468 = vrot.lane.b32.xlu1 %v8484_v44, %s7893_s21  ;;  %s8807_s21 = sld [smem:[#allocation25_spill]] }
 0x445   : > { %p8810_p11 = scmp.ne.s32.totalorder %s8807_s21, 0 }
 0x448   : > { %v2547_v35 = vpop.xlane.xlu0 %2546 }
 0x449   : > { %7580 = vrcp.f32 %v2547_v35 }
 0x44c   : > { %v4384_v36 = vpop.xlane.xlu0 %4383 }
 0x44d   : > { %v4385_v37 = vsub.f32 %v4381_v23, %v4384_v36 }
 0x44f   : > { %v4386_v38 = vmul.f32 1.442695, %v4385_v37 }
 0x451   : > { %7582 = vpow2.f32 %v4386_v38 }
 0x453   : > { %v7581_v39 = vpop.eup %7580 }
 0x454   : > { %v2549_v40 = vmul.f32 %v7581_v39, %v7577_v21 }
 0x456   : > { %v2551_v42 = vsel %vm2084_vm2, %v2549_v40, 0 }
 0x457   : > { %v2619_v43 = vand.u32 4294901760, %v2551_v42 }
 0x459   : > { %v2620_v46 = vsub.f32 %v2551_v42, %v2619_v43 }
 0x45b   : > { %v8548_v47 = vpop.eup %7582  ;;  %v2621_v49 = vand.u32 4294901760, %v2620_v46 }
 0x45c   : > { %v4388_v50 = vsel %vm2084_vm2, %v8548_v47, 0.0 }
 0x45d   : > { %4389 = vadd.xlane.f32.xlu0 %v4388_v50  ;;  %v2622_v52 = vsub.f32 %v2620_v46, %v2621_v49  ;;  %v5778_v50 = vld [vmem:[%s8806_s13 + $0x8] sm:$0xff] }
 0x45f   : > { %v2623_v53 = vand.u32 4294901760, %v2622_v52 }
 0x461   : > { %6933 = vmatmul.mubr.f32.vlgmr.msra.gmra.mrb[6].mxu1 %v2623_v53  ;;  %v5795_v53 = vand.u32 4294901760, %v5778_v50 }
 0x462   : > { %6936 = vmatpush3.msra.mxu1 %v2634_v54  ;;  %6937 = vmatprep.mubr.msk.f32.mxu1 %vm7890_vm0, %v7891_v1  ;;  %v5780_v54 = vld [vmem:[%s8806_s13 + $0x18] sm:$0xff] }
 0x463   : > { %6940 = vmatprep.subr.mxu1 %v7891_v1 }
 0x469   : > { %6938 = vmatmul.mubr.f32.vlgmr.msra.gmra.mrb[6].mxu1 %v2619_v43 }
 0x46a   : > { %6941 = vmatpush3.msra.mxu1 %v2631_v41  ;;  %6942 = vmatprep.mubr.msk.f32.mxu1 %vm7890_vm0, %v7891_v1 }
 0x46b   : > { %6945 = vmatprep.subr.mxu1 %v7891_v1 }
 0x471   : > { %6943 = vmatmul.mubr.f32.vlgmr.msra.gmra.mrb[6].mxu1 %v2620_v46 }
 0x472   : > { %6946 = vmatpush3.msra.mxu1 %v8487_v48  ;;  %6947 = vmatprep.mubr.msk.f32.mxu1 %vm7890_vm0, %v7891_v1 }
 0x473   : > { %4393 = vrot.lane.b32.xlu0 %v8484_v44, %s7892_s1  ;;  %6950 = vmatprep.subr.mxu1 %v7891_v1  ;;  %s7897_s1 = smov 24  }
 0x475   : > { %v5309_v55 = vpop.xlane.xlu0 %5308 }
 0x476   : > { %v5310_v56 = vsub.f32 %v5306_v28, %v5309_v55  ;;  %v5798_v55 = vand.u32 4294901760, %v5779_v51 }
 0x477   : > { %5318 = vrot.lane.b32.xlu0 %v8484_v44, %s7894_s16  ;;  %s8808_s16 = sld [smem:[#allocation31_spill]] }
 0x478   : > { %v5311_v57 = vmul.f32 1.442695, %v5310_v56  ;;  %v5801_v56 = vand.u32 4294901760, %v5780_v54 }
 0x479   : > { %6948 = vmatmul.mubr.f32.vlgmr.msra.gmra.mrb[6].mxu1 %v2621_v49  ;;  %v5777_v49 = vld [vmem:[%s8806_s13] sm:$0xff] }
 0x47a   : > { %7584 = vpow2.f32 %v5311_v57  ;;  %6951 = vmatpush3.msra.mxu1 %v2632_v45  ;;  %6952 = vmatprep.mubr.msk.f32.mxu1 %vm7890_vm0, %v7891_v1  ;;  %v5792_v52 = vand.u32 4294901760, %v5777_v49 }
 0x47b   : > { %6955 = vmatprep.subr.mxu1 %v7891_v1 }
 0x47c   : > { %v8649_v57 = vpack.c.bf16 %v5795_v53, %v5792_v52 }
 0x47e   : > { %7316 = vmatpush3.bf16.msra.mxu0 %v8649_v57 }
 0x47f   : > { %7317 = vmatprep.subr.bf16.mxu0 %v7889_v0 }
 0x481   : > { %6953 = vmatmul.mubr.f32.vlgmr.msra.gmra.mrb[6].mxu1 %v2619_v43 }
 0x482   : > { %6956 = vmatpush3.msra.mxu1 %v8487_v48  ;;  %6957 = vmatprep.mubr.msk.f32.mxu1 %vm7890_vm0, %v7891_v1 }
 0x483   : > { %6990 = vmatprep.subr.mxu1 %v7891_v1 }
 0x484   : > { %v8573_v58 = vpop.eup %7584 }
 0x485   : > { %v5313_v44 = vsel %vm2084_vm2, %v8573_v58, 0.0 }
 0x486   : > { %5314 = vadd.xlane.f32.xlu1 %v5313_v44  ;;  %v5879_v44 = vsub.f32 %v5778_v50, %v5795_v53 }
 0x489   : > { %6958 = vmatmul.mubr.f32.vlgmr.msra.gmra.mrb[6].mxu1 %v2619_v43 }
 0x48a   : > { %6992 = vmatprep.mubr.msk.f32.mxu1 %vm7890_vm0, %v7891_v1 }
 0x4bb   : > { %v3464_v59 = vpop.xlane.xlu1 %3463 }
 0x4bc   : > { %7586 = vrcp.f32 %v3464_v59  ;;  %v5886_v59 = vsub.f32 %v5779_v51, %v5798_v55 }
 0x4bf   : > { %v3469_v60 = vpop.permute.xlu1 %3468 }
 0x4c0   : > { %v3475_v61 = vand.u32 4294901760, %v3469_v60 }
 0x4c2   : > { %6991 = vmatpush3.msra.mxu1 %v3475_v61  ;;  %v3552_v63 = vsub.f32 %v3469_v60, %v3475_v61  ;;  %v5893_v60 = vsub.f32 %v5780_v54, %v5801_v56 }
 0x4c3   : > { %6995 = vmatprep.subr.mxu1 %v7891_v1 }
 0x4c4   : > { %v3553_v4 = vand.u32 4294901760, %v3552_v63 }
 0x4c6   : > { %v7587_v48 = vpop.eup %7586  ;;  %v3554_v7 = vsub.f32 %v3552_v63, %v3553_v4 }
 0x4c7   : > { %v3466_v62 = vmul.f32 %v7587_v48, %v8539_v33 }
 0x4c8   : > { %v3555_v10 = vand.u32 4294901760, %v3554_v7  ;;  %v5887_v7 = vand.u32 4294901760, %v5886_v59 }
 0x4c9   : > { %v3472_v2 = vsel %vm2084_vm2, %v3466_v62, 0 }
 0x4ca   : > { %v3540_v3 = vand.u32 4294901760, %v3472_v2 }
 0x4cc   : > { %v3541_v5 = vsub.f32 %v3472_v2, %v3540_v3  ;;  %v5880_v2 = vand.u32 4294901760, %v5879_v44 }
 0x4ce   : > { %v3542_v6 = vand.u32 4294901760, %v3541_v5 }
 0x4d0   : > { %v3543_v8 = vsub.f32 %v3541_v5, %v3542_v6 }
 0x4d2   : > { %v3544_v9 = vand.u32 4294901760, %v3543_v8  ;;  %v5894_v8 = vand.u32 4294901760, %v5893_v60 }
 0x4d4   : > { %6993 = vmatmul.mubr.f32.vlgmr.msra.gmra.mrb[8].mxu1 %v3544_v9 }
 0x4d5   : > { %6996 = vmatpush3.msra.mxu1 %v3555_v10  ;;  %6997 = vmatprep.mubr.msk.f32.mxu1 %vm7890_vm0, %v7891_v1  ;;  %v5888_v10 = vsub.f32 %v5886_v59, %v5887_v7 }
 0x4d6   : > { %7000 = vmatprep.subr.mxu1 %v7891_v1 }
 0x4dc   : > { %6998 = vmatmul.mubr.f32.vlgmr.msra.gmra.mrb[8].mxu1 %v3540_v3 }
 0x4dd   : > { %7001 = vmatpush3.msra.mxu1 %v3552_v63  ;;  %7002 = vmatprep.mubr.msk.f32.mxu1 %vm7890_vm0, %v7891_v1 }
 0x4de   : > { %7005 = vmatprep.subr.mxu1 %v7891_v1 }
 0x4e4   : > { %7003 = vmatmul.mubr.f32.vlgmr.msra.gmra.mrb[8].mxu1 %v3541_v5 }
 0x4e5   : > { %7006 = vmatpush3.msra.mxu1 %v3475_v61  ;;  %7007 = vmatprep.mubr.msk.f32.mxu1 %vm7890_vm0, %v7891_v1 }
 0x4e6   : > { %7010 = vmatprep.subr.mxu1 %v7891_v1 }
 0x4ea   : > { %v4390_v11 = vpop.xlane.xlu0 %4389 }
 0x4eb   : > { %7588 = vrcp.f32 %v4390_v11  ;;  %v5895_v11 = vsub.f32 %v5893_v60, %v5894_v8 }
 0x4ec   : > { %7008 = vmatmul.mubr.f32.vlgmr.msra.gmra.mrb[8].mxu1 %v3542_v6 }
 0x4ed   : > { %7011 = vmatpush3.msra.mxu1 %v3553_v4  ;;  %7012 = vmatprep.mubr.msk.f32.mxu1 %vm7890_vm0, %v7891_v1  ;;  %v5881_v4 = vsub.f32 %v5879_v44, %v5880_v2 }
 0x4ee   : > { %7015 = vmatprep.subr.mxu1 %v7891_v1  ;;  %v4394_v12 = vpop.permute.xlu0 %4393 }
 0x4ef   : > { %v4400_v13 = vand.u32 4294901760, %v4394_v12  ;;  %v5882_v6 = vand.u32 4294901760, %v5881_v4 }
 0x4f1   : > { %v4477_v16 = vsub.f32 %v4394_v12, %v4400_v13  ;;  %v5889_v12 = vand.u32 4294901760, %v5888_v10 }
 0x4f2   : > { %v5319_v27 = vpop.permute.xlu0 %5318 }
 0x4f3   : > { %v4478_v19 = vand.u32 4294901760, %v4477_v16  ;;  %v5325_v29 = vand.u32 4294901760, %v5319_v27 }
 0x4f4   : > { %7013 = vmatmul.mubr.f32.vlgmr.msra.gmra.mrb[8].mxu1 %v3540_v3 }
 0x4f5   : > { %v7589_v14 = vpop.eup %7588  ;;  %7016 = vmatpush3.msra.mxu1 %v3475_v61  ;;  %7017 = vmatprep.mubr.msk.f32.mxu1 %vm7890_vm0, %v7891_v1  ;;  %v4479_v22 = vsub.f32 %v4477_v16, %v4478_v19  ;;  %v5402_v32 = vsub.f32 %v5319_v27, %v5325_v29  ;;  %v8652_v61 = vpack.c.bf16 %v5801_v56, %v5798_v55 }
 0x4f6   : > { %v4392_v15 = vmul.f32 %v7589_v14, %v8548_v47  ;;  %7050 = vmatprep.subr.mxu1 %v7891_v1 }
 0x4f7   : > { %v4480_v25 = vand.u32 4294901760, %v4479_v22  ;;  %v5403_v35 = vand.u32 4294901760, %v5402_v32  ;;  %7319 = vmatpush3.bf16.msra.mxu0 %v8652_v61 }
 0x4f8   : > { %v4397_v17 = vsel %vm2084_vm2, %v4392_v15, 0  ;;  %7320 = vmatprep.subr.bf16.mxu0 %v7889_v0 }
 0x4f9   : > { %v4465_v18 = vand.u32 4294901760, %v4397_v17  ;;  %v5404_v38 = vsub.f32 %v5402_v32, %v5403_v35 }
 0x4fb   : > { %v4466_v20 = vsub.f32 %v4397_v17, %v4465_v18  ;;  %v5405_v40 = vand.u32 4294901760, %v5404_v38 }
 0x4fc   : > { %7018 = vmatmul.mubr.f32.vlgmr.msra.gmra.mrb[8].mxu1 %v3540_v3 }
 0x4fd   : > { %7051 = vmatpush3.msra.mxu1 %v4400_v13  ;;  %7052 = vmatprep.mubr.msk.f32.mxu1 %vm7890_vm0, %v7891_v1  ;;  %v4467_v21 = vand.u32 4294901760, %v4466_v20 }
 0x4fe   : > { %7055 = vmatprep.subr.mxu1 %v7891_v1 }
 0x4ff   : > { %v4468_v23 = vsub.f32 %v4466_v20, %v4467_v21 }
 0x501   : > { %v4469_v24 = vand.u32 4294901760, %v4468_v23 }
 0x503   : > { %7053 = vmatmul.mubr.f32.vlgmr.msra.gmra.mrb[10].mxu1 %v4469_v24 }
 0x504   : > { %7056 = vmatpush3.msra.mxu1 %v4480_v25  ;;  %7057 = vmatprep.mubr.msk.f32.mxu1 %vm7890_vm0, %v7891_v1 }
 0x505   : > { %7060 = vmatprep.subr.mxu1 %v7891_v1 }
 0x50b   : > { %7058 = vmatmul.mubr.f32.vlgmr.msra.gmra.mrb[10].mxu1 %v4465_v18 }
 0x50c   : > { %7061 = vmatpush3.msra.mxu1 %v4477_v16  ;;  %7062 = vmatprep.mubr.msk.f32.mxu1 %vm7890_vm0, %v7891_v1  ;;  %v7330_v16 = vpack.c.bf16 %v5893_v60, %v5886_v59 }
 0x50d   : > { %7065 = vmatprep.subr.mxu1 %v7891_v1 }
 0x513   : > { %v5315_v26 = vpop.xlane.xlu1 %5314  ;;  %7063 = vmatmul.mubr.f32.vlgmr.msra.gmra.mrb[10].mxu1 %v4466_v20 }
 0x514   : > { %7590 = vrcp.f32 %v5315_v26  ;;  %7066 = vmatpush3.msra.mxu1 %v4400_v13  ;;  %7067 = vmatprep.mubr.msk.f32.mxu1 %vm7890_vm0, %v7891_v1 }
 0x515   : > { %7070 = vmatprep.subr.mxu1 %v7891_v1 }
 0x51b   : > { %7068 = vmatmul.mubr.f32.vlgmr.msra.gmra.mrb[10].mxu1 %v4467_v21 }
 0x51c   : > { %7071 = vmatpush3.msra.mxu1 %v4478_v19  ;;  %7072 = vmatprep.mubr.msk.f32.mxu1 %vm7890_vm0, %v7891_v1  ;;  %v7342_v19 = vpack.c.bf16 %v5894_v8, %v5887_v7 }
 0x51d   : > { %7075 = vmatprep.subr.mxu1 %v7891_v1 }
 0x51e   : > { %v7591_v28 = vpop.eup %7590 }
 0x51f   : > { %v5317_v30 = vmul.f32 %v7591_v28, %v8573_v58  ;;  %v5872_v58 = vsub.f32 %v5777_v49, %v5792_v52 }
 0x521   : > { %v5322_v31 = vsel %vm2084_vm2, %v5317_v30, 0  ;;  %v5873_v63 = vand.u32 4294901760, %v5872_v58  ;;  %v7327_v15 = vpack.c.bf16 %v5879_v44, %v5872_v58 }
 0x522   : > { %v5390_v33 = vand.u32 4294901760, %v5322_v31 }
 0x523   : > { %7073 = vmatmul.mubr.f32.vlgmr.msra.gmra.mrb[10].mxu1 %v4465_v18  ;;  %v5874_v3 = vsub.f32 %v5872_v58, %v5873_v63 }
 0x524   : > { %7076 = vmatpush3.msra.mxu1 %v4400_v13  ;;  %7077 = vmatprep.mubr.msk.f32.mxu1 %vm7890_vm0, %v7891_v1  ;;  %v5391_v34 = vsub.f32 %v5322_v31, %v5390_v33  ;;  %v5896_v13 = vand.u32 4294901760, %v5895_v11 }
 0x525   : > { %7110 = vmatprep.subr.mxu1 %v7891_v1  ;;  %v5875_v5 = vand.u32 4294901760, %v5874_v3 }
 0x526   : > { %v5392_v36 = vand.u32 4294901760, %v5391_v34  ;;  %v7324_v14 = vpack.c.bf16 %v5896_v13, %v5889_v12 }
 0x527   : > { %v7321_v9 = vpack.c.bf16 %v5882_v6, %v5875_v5 }
 0x528   : > { %v5393_v37 = vsub.f32 %v5391_v34, %v5392_v36 }
 0x52a   : > { %v5394_v39 = vand.u32 4294901760, %v5393_v37 }
 0x52b   : > { %7078 = vmatmul.mubr.f32.vlgmr.msra.gmra.mrb[10].mxu1 %v4465_v18  ;;  %v7339_v18 = vpack.c.bf16 %v5880_v2, %v5873_v63 }
 0x52c   : > { %7111 = vmatpush3.msra.mxu1 %v5325_v29  ;;  %7112 = vmatprep.mubr.msk.f32.mxu1 %vm7890_vm0, %v7891_v1 }
 0x52d   : > { %7115 = vmatprep.subr.mxu1 %v7891_v1 }
 0x52f   : > { %7113 = vmatmul.mubr.f32.vlgmr.msra.gmra.mrb[12].mxu1 %v5394_v39 }
 0x530   : > { %7116 = vmatpush3.msra.mxu1 %v5405_v40  ;;  %7117 = vmatprep.mubr.msk.f32.mxu1 %vm7890_vm0, %v7891_v1 }
 0x531   : > { %7120 = vmatprep.subr.mxu1 %v7891_v1 }
 0x537   : > { %7118 = vmatmul.mubr.f32.vlgmr.msra.gmra.mrb[12].mxu1 %v5390_v33 }
 0x538   : > { %7121 = vmatpush3.msra.mxu1 %v5402_v32  ;;  %7122 = vmatprep.mubr.msk.f32.mxu1 %vm7890_vm0, %v7891_v1 }
 0x539   : > { %7125 = vmatprep.subr.mxu1 %v7891_v1 }
 0x53f   : > { %7123 = vmatmul.mubr.f32.vlgmr.msra.gmra.mrb[12].mxu1 %v5391_v34 }
 0x540   : > { %7126 = vmatpush3.msra.mxu1 %v5325_v29  ;;  %7127 = vmatprep.mubr.msk.f32.mxu1 %vm7890_vm0, %v7891_v1 }
 0x541   : > { %7130 = vmatprep.subr.mxu1 %v7891_v1 }
 0x547   : > { %7128 = vmatmul.mubr.f32.vlgmr.msra.gmra.mrb[12].mxu1 %v5392_v36 }
 0x548   : > { %7131 = vmatpush3.msra.mxu1 %v5403_v35  ;;  %7132 = vmatprep.mubr.msk.f32.mxu1 %vm7890_vm0, %v7891_v1 }
 0x549   : > { %7135 = vmatprep.subr.mxu1 %v7891_v1 }
 0x54f   : > { %7133 = vmatmul.mubr.f32.vlgmr.msra.gmra.mrb[12].mxu1 %v5390_v33 }
 0x550   : > { %7136 = vmatpush3.msra.mxu1 %v5325_v29  ;;  %7137 = vmatprep.mubr.msk.f32.mxu1 %vm7890_vm0, %v7891_v1  ;;  %v6481_v29 = vld [vmem:[%s8808_s16] ss:$0 sm:$0xff] }
 0x557   : > { %7138 = vmatmul.mubr.f32.vlgmr.msra.gmra.mrb[12].mxu1 %v5390_v33 }
 0x55c   : > { %v2995_v41 = vpop.f32.mrb[6].mxu1 }
 0x55d   : > { %2999 = vst.msk [vmem:[#allocation2] sm:$0xff] %vm2084_vm2, %v2995_v41  ;;  %v6959_v42 = vpop.f32.mrb[7].mxu1 }
 0x5cf   : > { %v3916_v43 = vpop.f32.mrb[8].mxu1 }
 0x5d0   : > { %3921 = vrot.lane.b32.xlu0 %v3916_v43, %s7895_s20  ;;  %v7019_v45 = vpop.f32.mrb[9].mxu1  ;;  %s6291_s20 = sshll.u32 %s579_s26, 4  ;;  %s8691_s20 = int_to_ptr.vmem [resolvable:$true] %s6291_s20 }
 0x5d1   : > { %s7796_s12 = scalar_lea.vmem %s8691_s20, 128  ;;  %p7803_p13 = scmp.lt.s32.totalorder %s8691_s20, %s7801_s4 }
 0x5d2   : > { %p7797_p7 = scmp.ne.s32.totalorder %s8691_s20, %s7796_s12  ;;  %p7804_p9 = scmp.lt.s32.totalorder %s7802_s14, %s7796_s12 }
 0x5d4   : > { %p7798_p10 = pnand %p7797_p7, %p8810_p11  ;;  %p7805_p3 = por %p7804_p9, %p7803_p13 }
 0x5d6   : > { %p7799_p1 = pneg %p7798_p10 }
 0x5d8   : > { %p7806_p5 = pnand %p7805_p3, %p7799_p1 }
 0x5fe   : > { %v4841_v46 = vpop.f32.mrb[10].mxu1 }
 0x5ff   : > { %4846 = vrot.lane.b32.xlu0 %v4841_v46, %s7896_s15  ;;  %v7079_v47 = vpop.f32.mrb[11].mxu1 }
 0x62a   : > { %v5766_v48 = vpop.f32.mrb[12].mxu1 }
 0x62b   : > { %5771 = vrot.lane.b32.xlu0 %v5766_v48, %s7897_s1  ;;  %v7139_v62 = vpop.f32.mrb[13].mxu1 }
 0x642   : > { %v3922_v17 = vpop.permute.xlu0 %3921 }
 0x643   : > { %3925 = vst.msk [vmem:[#allocation2] sm:$0xff] %vm3924_vm4, %v3922_v17 }
 0x671   : > { %v4847_v20 = vpop.permute.xlu0 %4846 }
 0x672   : > { %4850 = vst.msk [vmem:[#allocation2] sm:$0xff] %vm4849_vm5, %v4847_v20 }
 0x69d   : > { %v5772_v21 = vpop.permute.xlu0 %5771 }
 0x69e   : > { %5775 = vst.msk [vmem:[#allocation2] sm:$0xff] %vm5774_vm6, %v5772_v21 }
 0x6a5   : > { %v5776_v22 = vld [vmem:[#allocation2] sm:$0xff] }
 0x6a6   : > { %v5789_v23 = vsel %vm592_vm1, %v5776_v22, 0 }
 0x6a7   : > { %v5860_v24 = vand.u32 4294901760, %v5789_v23 }
 0x6a9   : > { %v5861_v25 = vsub.f32 %v5789_v23, %v5860_v24 }
 0x6ab   : > { %v5862_v26 = vand.u32 4294901760, %v5861_v25 }
 0x6ad   : > { %v5863_v27 = vsub.f32 %v5861_v25, %v5862_v26 }
 0x6af   : > { %v5864_v28 = vand.u32 4294901760, %v5863_v27 }
 0x6b1   : > { %7149 = vmatmul.mubr.f32.vlgmr.msra.gmra.mrb[10].mxu0 %v5864_v28 }
 0x6b2   : > { %7322 = vmatpush3.bf16.msra.mxu0 %v7321_v9  ;;  %7159 = vmatprep.mubr.msk.f32.mxu0 %vm7890_vm0, %v7891_v1 }
 0x6b3   : > { %7323 = vmatprep.subr.bf16.mxu0 %v7889_v0 }
 0x6b6   : > { %7325 = vmatpush3.bf16.msra.mxu0 %v7324_v14 }
 0x6b7   : > { %7326 = vmatprep.subr.bf16.mxu0 %v7889_v0 }
 0x6b9   : > { %7160 = vmatmul.mubr.f32.vlgmr.msra.gmra.mrb[10].mxu0 %v5860_v24 }
 0x6ba   : > { %7328 = vmatpush3.bf16.msra.mxu0 %v7327_v15  ;;  %7170 = vmatprep.mubr.msk.f32.mxu0 %vm7890_vm0, %v7891_v1 }
 0x6bb   : > { %7329 = vmatprep.subr.bf16.mxu0 %v7889_v0 }
 0x6be   : > { %7331 = vmatpush3.bf16.msra.mxu0 %v7330_v16 }
 0x6bf   : > { %7332 = vmatprep.subr.bf16.mxu0 %v7889_v0 }
 0x6c1   : > { %7171 = vmatmul.mubr.f32.vlgmr.msra.gmra.mrb[10].mxu0 %v5861_v25 }
 0x6c2   : > { %7334 = vmatpush3.bf16.msra.mxu0 %v8649_v57  ;;  %7181 = vmatprep.mubr.msk.f32.mxu0 %vm7890_vm0, %v7891_v1 }
 0x6c3   : > { %7335 = vmatprep.subr.bf16.mxu0 %v7889_v0 }
 0x6c6   : > { %7337 = vmatpush3.bf16.msra.mxu0 %v8652_v61 }
 0x6c7   : > { %7338 = vmatprep.subr.bf16.mxu0 %v7889_v0 }
 0x6c9   : > { %7182 = vmatmul.mubr.f32.vlgmr.msra.gmra.mrb[10].mxu0 %v5862_v26 }
 0x6ca   : > { %7340 = vmatpush3.bf16.msra.mxu0 %v7339_v18  ;;  %7192 = vmatprep.mubr.msk.f32.mxu0 %vm7890_vm0, %v7891_v1 }
 0x6cb   : > { %7341 = vmatprep.subr.bf16.mxu0 %v7889_v0 }
 0x6ce   : > { %7343 = vmatpush3.bf16.msra.mxu0 %v7342_v19 }
 0x6cf   : > { %7344 = vmatprep.subr.bf16.mxu0 %v7889_v0 }
 0x6d1   : > { %7193 = vmatmul.mubr.f32.vlgmr.msra.gmra.mrb[10].mxu0 %v5860_v24 }
 0x6d2   : > { %7346 = vmatpush3.bf16.msra.mxu0 %v8649_v57  ;;  %7203 = vmatprep.mubr.msk.f32.mxu0 %vm7890_vm0, %v7891_v1 }
 0x6d3   : > { %7347 = vmatprep.subr.bf16.mxu0 %v7889_v0 }
 0x6d6   : > { %7349 = vmatpush3.bf16.msra.mxu0 %v8652_v61 }
 0x6d9   : > { %7204 = vmatmul.mubr.f32.vlgmr.msra.gmra.mrb[10].mxu0 %v5860_v24 }
 0x7ac   : > { %v6272_v30 = vpop.f32.mrb[10].mxu0 }
 0x7ad   : > { %v7354_v31 = vadd.f32 %v6481_v29, %v6272_v30  ;;  %v7205_v32 = vpop.f32.mrb[11].mxu0 }
 0x7af   : > { %6276 = vst.msk [vmem:[%s579_s26] sm:$0xff] %vm592_vm1, %v7354_v31 }
 0x7b0   : > { %7809 = shalt.err (!%p7806_p5)
}
 0x7b1   : > { %s7810_s6 = scalar_lea.hbm %s8689_s30, 128  ;;  %s7814_s1 = scalar_lea.hbm %s8809_s29, 256 }
 0x7b2   : > { %p7811_p6 = scmp.ne.s32.totalorder %s8689_s30, %s7810_s6  ;;  %p7815_p4 = scmp.lt.u32.totalorder %s8689_s30, %s8809_s29 }
 0x7b3   : > { %p7816_p0 = scmp.lt.u32.totalorder %s7814_s1, %s7810_s6  ;;  %p7818_p7 = scmp.lt.u32.totalorder %s7810_s6, %s8689_s30 }
 0x7b4   : > { %p7812_p2 = pnand %p7811_p6, %p8810_p11 }
 0x7b5   : > { %p7817_p8 = por %p7816_p0, %p7815_p4 }
 0x7b6   : > { %p7813_p12 = pneg %p7812_p2 }
 0x7b7   : > { %p7819_p10 = por %p7818_p7, %p7817_p8 }
 0x7b9   : > { %p7820_p1 = pnand %p7819_p10, %p7813_p12 }
 0x7bb   : > { %7823 = shalt.err (!%p7820_p1)
}
 0x7bc   : > { %7493 = dma.vmem_to_hbm [thread:$0]  (%p8810_p11), %s8691_s20, 128, %s8689_s30, %s6278_s11  }
 0x7bd PF: > { %s8811_s16 = sld [smem:[#allocation22_spill]]  ;;  %s8812_s18 = sld [smem:[#allocation23_spill]] }
 0x7be   : > { %p8814_p9 = scmp.ge.s32.totalorder %s7878_s24, 2 }
 0x7c3   : > { %s6303_s26 = sand.u32 1, %s8811_s16   ;;  %p8813_p13 = scmp.ne.s32.totalorder %s8812_s18, 0 }
 0x7c4   : > { %s6304_s15 = scalar_lea.sflag [#allocation5], %s6303_s26 }
 0x7c5   : > { %p7519_p3 = pnand %p8814_p9, %p8813_p13 }
 0x7c7   : > { %7861 = dma.done.wait (!%p7519_p3), %s6304_s15, 128  }
 0x7c8   : > { %7863 = vsyncadd (!%p7519_p3), %s6304_s15, 4294967168  ;;  %s8815_s24 = sld [smem:[#allocation24_spill]]  ;;  %s8816_s19 = sld [smem:[#allocation26_spill]] }
 0x7c9   : > { %s8817_s21 = smov %s7870_s22  ;;  %s8818_s22 = smov %s7874_s23 }
 0x7ce   : > { %p32_p5 = scmp.ge.s32.totalorder %s8815_s24, 4   ;;  %s8819_s23 = smov %s8816_s19 }
 0x7d0   :  { %34 = sbr.rel (!%p32_p5) target bundleno = 17 (0x11), region = 162 }
 0x7d7   :  { %6309 = vsyncpa [#allocation4], 1 }
 0x7d8   :  { %6311 = vsyncpa [#allocation4 + $0x1], 1 }
 0x7d9   :  { %6312 = vsyncpa [#allocation7], 1 }
 0x7da   :  { %6314 = vsyncpa [#allocation7 + $0x1], 1 }
 0x7db   :  { %6315 = vsyncpa [#allocation10], 1 }
 0x7dc   :  { %6317 = vsyncpa [#allocation10 + $0x1], 1 }
 0x7dd   :  { %6318 = vsyncpa [#allocation13], 1 }
 0x7de   :  { %6319 = vsyncpa [#allocation5], 1 }
 0x7df   :  { %6321 = vsyncpa [#allocation5 + $0x1], 1 }

</bundles_post_ra>
